<compile_context>
chip_gen: v7x
topology: tpu7x:2x2x1
jax: 0.10.0
libtpu: 0.0.40
codegen_flags: <defaults>
</compile_context>

<pallas_src>
import functools

import jax
import jax.numpy as jnp
from jax.experimental import pallas as pl
from jax.experimental.pallas import tpu as pltpu


def _attention_kernel(x_ref, gamma_ref, beta_ref, w_qkv_ref, w_out_ref, o_ref,
                      q_scr, k_scr, v_scr, *, heads, dim_head, eps, block_q):
    """One grid step = (batch element b, query tile qi)."""
    inner = heads * dim_head
    scale = dim_head ** (-0.5)
    qi = pl.program_id(1)

    # ---- once per batch element (qi == 0): LayerNorm full sequence + one fused
    #      QKV projection; result kept head-major in bf16 VMEM scratch, resident
    #      across all query tiles of this batch element.
    @pl.when(qi == 0)
    def _():
        gamma = gamma_ref[...].astype(jnp.float32)          # (1, D)
        beta = beta_ref[...].astype(jnp.float32)            # (1, D)
        x = x_ref[0].astype(jnp.float32)                    # (N, D)
        mean = jnp.mean(x, axis=-1, keepdims=True)
        var = jnp.mean((x - mean) ** 2, axis=-1, keepdims=True)
        xn = ((x - mean) * jax.lax.rsqrt(var + eps) * gamma + beta
              ).astype(jnp.bfloat16)
        qkv = jnp.dot(xn, w_qkv_ref[...],                   # (N, 3*inner), f32 acc
                      preferred_element_type=jnp.float32)
        for h in range(heads):                              # one-time head-major relayout
            lo = h * dim_head
            # 1/sqrt(Dh) folded into Q once per batch element (not per tile).
            q_scr[h] = (qkv[:, lo:lo + dim_head] * scale).astype(jnp.bfloat16)
            k_scr[h] = qkv[:, inner + lo:inner + lo + dim_head].astype(jnp.bfloat16)
            v_scr[h] = qkv[:, 2 * inner + lo:2 * inner + lo + dim_head].astype(jnp.bfloat16)

    # ---- per query tile: batched-over-heads attention; K consumed in its
    #      stored layout (no transpose), no per-head Python loop.
    q_start = pl.multiple_of(qi * block_q, block_q)
    qh = q_scr[:, pl.ds(q_start, block_q), :]               # (H, bq, Dh) bf16
    k = k_scr[...]                                          # (H, N,  Dh) bf16
    v = v_scr[...]                                          # (H, N,  Dh) bf16

    s = jnp.einsum('hqd,hkd->hqk', qh, k,
                   preferred_element_type=jnp.float32)      # (H, bq, N) f32
    s = s - jnp.max(s, axis=-1, keepdims=True)
    p = jnp.exp(s)
    p = p * pl.reciprocal(jnp.sum(p, axis=-1, keepdims=True), approx=True)
    o = jnp.einsum('hqk,hkd->hqd', p.astype(jnp.bfloat16), v,
                   preferred_element_type=jnp.float32)      # (H, bq, Dh) f32

    # ---- output projection without re-merging heads:
    #      out = sum_h o[h] @ w_out[h]   (w_out stored head-major (H, Dh, D))
    out = jnp.einsum('hqd,hde->hqe', o.astype(jnp.bfloat16), w_out_ref[...],
                     preferred_element_type=jnp.float32)    # (H, bq, D)
    o_ref[0] = jnp.sum(out, axis=0).astype(o_ref.dtype)


def attention_pallas(x, gamma, beta, w_qkv, w_out, *, heads, dim_head,
                     eps=1e-5, block_q=None, param_dtype=jnp.bfloat16):
    """x: (B, N, D); gamma/beta: (D,); w_qkv: (D, 3*H*Dh); w_out: (H*Dh, D)."""
    B, N, D = x.shape
    inner = heads * dim_head
    assert w_qkv.shape == (D, 3 * inner)
    assert w_out.shape == (inner, D)

    if block_q is None:
        block_q = 128 if (N % 128 == 0) else N
    assert N % block_q == 0
    assert block_q == N or block_q % 8 == 0   # sublane-aligned Q-scratch slices
    num_q_blocks = N // block_q

    gamma2 = gamma.reshape(1, D).astype(jnp.float32)
    beta2 = beta.reshape(1, D).astype(jnp.float32)
    # bf16 storage for matmul operands (MXU-native, f32 accumulation in-kernel).
    w_qkv_b = w_qkv.astype(param_dtype)                                 # (D, 3*inner)
    w_out_h = w_out.reshape(heads, dim_head, D).astype(param_dtype)     # (H, Dh, D)

    kernel = functools.partial(_attention_kernel, heads=heads, dim_head=dim_head,
                               eps=eps, block_q=block_q)

    def build(single_buffer_weights):
        def const_spec(shape):
            ndim = len(shape)

            def index_map(b, qi):
                return (0,) * ndim

            if single_buffer_weights:
                # Constant index map across the whole grid -> one VMEM buffer
                # instead of the default double buffer (matters on v7x, 64 MiB).
                return pl.BlockSpec(shape, index_map, pipeline_mode=pl.Buffered(1))
            return pl.BlockSpec(shape, index_map)

        grid_spec = pltpu.PrefetchScalarGridSpec(
            num_scalar_prefetch=0,
            grid=(B, num_q_blocks),
            in_specs=[
                # Full sequence for this batch element (constant across qi ->
                # DMA'd only when b changes).
                pl.BlockSpec((1, N, D), lambda b, qi: (b, 0, 0)),
                const_spec((1, D)),                                       # LN gamma
                const_spec((1, D)),                                       # LN beta
                const_spec((D, 3 * inner)),                               # W_qkv
                const_spec((heads, dim_head, D)),                         # W_out (head-major)
            ],
            out_specs=pl.BlockSpec((1, block_q, D), lambda b, qi: (b, qi, 0)),
            scratch_shapes=[
                pltpu.VMEM((heads, N, dim_head), jnp.bfloat16),  # Q (head-major, pre-scaled)
                pltpu.VMEM((heads, N, dim_head), jnp.bfloat16),  # K resident
                pltpu.VMEM((heads, N, dim_head), jnp.bfloat16),  # V resident
            ],
        )
        return pl.pallas_call(
            kernel,
            out_shape=jax.ShapeDtypeStruct((B, N, D), x.dtype),
            grid_spec=grid_spec,
            compiler_params=pltpu.CompilerParams(
                dimension_semantics=("parallel", "arbitrary"),
                vmem_limit_bytes=64 * 1024 * 1024,
            ),
        )

    args = (x, gamma2, beta2, w_qkv_b, w_out_h)
    try:
        return build(True)(*args)
    except Exception:
        # pl.Buffered(1) single-buffering not supported by this jax/libtpu
        # build: fall back to default double buffering (identical results,
        # just 2x weight VMEM).
        return build(False)(*args)


def attention_ref(x, gamma, beta, w_qkv, w_out, *, heads, dim_head, eps=1e-5):
    """Pure-JAX f32 reference mirroring the PyTorch forward (sanity check)."""
    B, N, D = x.shape
    inner = heads * dim_head
    mean = jnp.mean(x, axis=-1, keepdims=True)
    var = jnp.mean((x - mean) ** 2, axis=-1, keepdims=True)
    xn = (x - mean) / jnp.sqrt(var + eps) * gamma + beta
    qkv = xn @ w_qkv
    q, k, v = jnp.split(qkv, 3, axis=-1)

    def split_heads(t):  # 'b n (h d) -> b h n d'
        return t.reshape(B, N, heads, dim_head).transpose(0, 2, 1, 3)

    q, k, v = map(split_heads, (q, k, v))
    dots = jnp.einsum('bhnd,bhmd->bhnm', q, k) * (dim_head ** -0.5)
    attn = jax.nn.softmax(dots, axis=-1)
    out = jnp.einsum('bhnm,bhmd->bhnd', attn, v)
    out = out.transpose(0, 2, 1, 3).reshape(B, N, inner)  # 'b h n d -> b n (h d)'
    return out @ w_out


if __name__ == "__main__":
    # Small shapes consistent with the module: dim=32, heads=4, dim_head=16.
    B, N, D = 2, 8, 32
    heads, dim_head = 4, 16
    inner = heads * dim_head

    key = jax.random.PRNGKey(0)
    kx, kqkv, kout = jax.random.split(key, 3)

    x = jax.random.normal(kx, (B, N, D), dtype=jnp.float32)
    # Deterministic parameter init (synthetic weights, not a checkpoint load).
    gamma = jnp.ones((D,), dtype=jnp.float32)      # LayerNorm weight
    beta = jnp.zeros((D,), dtype=jnp.float32)      # LayerNorm bias
    w_qkv = jax.random.normal(kqkv, (D, 3 * inner), dtype=jnp.float32) * (D ** -0.5)
    w_out = jax.random.normal(kout, (inner, D), dtype=jnp.float32) * (inner ** -0.5)

    out = attention_pallas(x, gamma, beta, w_qkv, w_out,
                           heads=heads, dim_head=dim_head)
    out = jax.block_until_ready(out)

    ref = attention_ref(x, gamma, beta, w_qkv, w_out,
                        heads=heads, dim_head=dim_head)
    assert out.shape == (B, N, D)
    # Tolerance reflects bf16 MXU operands + approx reciprocal vs pure-f32 reference.
    assert jnp.allclose(out, ref, atol=5e-2, rtol=5e-2), "mismatch vs reference"

    print("KERNEL_OK")
</pallas_src>

<mosaic_0001>
module attributes {stable_mosaic.version = 11 : i64} {
  func.func @_attention_kernel(%arg0: i32, %arg1: i32, %arg2: memref<1x8x32xf32, #tpu.memory_space<vmem>>, %arg3: memref<1x32xf32, #tpu.memory_space<vmem>>, %arg4: memref<1x32xf32, #tpu.memory_space<vmem>>, %arg5: memref<32x192xbf16, #tpu.memory_space<vmem>>, %arg6: memref<4x16x32xbf16, #tpu.memory_space<vmem>>, %arg7: memref<1x8x32xf32, #tpu.memory_space<vmem>>, %arg8: memref<4x8x16xbf16, #tpu.memory_space<vmem>>, %arg9: memref<4x8x16xbf16, #tpu.memory_space<vmem>>, %arg10: memref<4x8x16xbf16, #tpu.memory_space<vmem>>) attributes {dimension_semantics = [#tpu.dimension_semantics<parallel>, #tpu.dimension_semantics<arbitrary>], iteration_bounds = array<i64: 2, 1>, scalar_prefetch = 0 : i64, scratch_operands = 3 : i64, tpu.core_type = #tpu.core_type<tc>, window_params = [{transform_indices = @transform_0, window_bounds = array<i64: 1, 8, 32>}, {pipeline_mode = #tpu.pipeline_mode<synchronous>, transform_indices = @transform_1, window_bounds = array<i64: 1, 32>}, {pipeline_mode = #tpu.pipeline_mode<synchronous>, transform_indices = @transform_2, window_bounds = array<i64: 1, 32>}, {pipeline_mode = #tpu.pipeline_mode<synchronous>, transform_indices = @transform_3, window_bounds = array<i64: 32, 192>}, {pipeline_mode = #tpu.pipeline_mode<synchronous>, transform_indices = @transform_4, window_bounds = array<i64: 4, 16, 32>}, {transform_indices = @transform_5, window_bounds = array<i64: 1, 8, 32>}]} {
    %c0_i32 = arith.constant 0 : i32
    %0 = arith.cmpi eq, %arg1, %c0_i32 : i32
    %1 = arith.extui %0 : i1 to i32
    %c0_i32_0 = arith.constant 0 : i32
    %2 = arith.cmpi ne, %1, %c0_i32_0 : i32
    scf.if %2 {
      %c0_19 = arith.constant 0 : index
      %c0_20 = arith.constant 0 : index
      %29 = vector.load %arg3[%c0_19, %c0_20] : memref<1x32xf32, #tpu.memory_space<vmem>>, vector<1x32xf32>
      %c0_21 = arith.constant 0 : index
      %c0_22 = arith.constant 0 : index
      %30 = vector.load %arg4[%c0_21, %c0_22] : memref<1x32xf32, #tpu.memory_space<vmem>>, vector<1x32xf32>
      %c0_23 = arith.constant 0 : index
      %c0_24 = arith.constant 0 : index
      %c0_25 = arith.constant 0 : index
      %31 = vector.load %arg2[%c0_23, %c0_24, %c0_25] : memref<1x8x32xf32, #tpu.memory_space<vmem>>, vector<1x8x32xf32>
      %32 = vector.shape_cast %31 : vector<1x8x32xf32> to vector<8x32xf32>
      %cst_26 = arith.constant dense<0.000000e+00> : vector<8xf32>
      %33 = vector.multi_reduction <add>, %32, %cst_26 [1] : vector<8x32xf32> to vector<8xf32>
      %34 = vector.shape_cast %33 : vector<8xf32> to vector<8x1xf32>
      %cst_27 = arith.constant 3.200000e+01 : f32
      %35 = vector.broadcast %cst_27 : f32 to vector<8x1xf32>
      %36 = arith.divf %34, %35 : vector<8x1xf32>
      %37 = vector.broadcast %36 : vector<8x1xf32> to vector<8x32xf32>
      %38 = arith.subf %32, %37 : vector<8x32xf32>
      %39 = arith.mulf %38, %38 : vector<8x32xf32>
      %cst_28 = arith.constant dense<0.000000e+00> : vector<8xf32>
      %40 = vector.multi_reduction <add>, %39, %cst_28 [1] : vector<8x32xf32> to vector<8xf32>
      %41 = vector.shape_cast %40 : vector<8xf32> to vector<8x1xf32>
      %cst_29 = arith.constant 3.200000e+01 : f32
      %42 = vector.broadcast %cst_29 : f32 to vector<8x1xf32>
      %43 = arith.divf %41, %42 : vector<8x1xf32>
      %44 = vector.broadcast %36 : vector<8x1xf32> to vector<8x32xf32>
      %45 = arith.subf %32, %44 : vector<8x32xf32>
      %cst_30 = arith.constant 9.99999974E-6 : f32
      %46 = vector.broadcast %cst_30 : f32 to vector<8x1xf32>
      %47 = arith.addf %43, %46 : vector<8x1xf32>
      %48 = math.rsqrt %47 : vector<8x1xf32>
      %49 = vector.broadcast %48 : vector<8x1xf32> to vector<8x32xf32>
      %50 = arith.mulf %45, %49 : vector<8x32xf32>
      %51 = vector.broadcast %29 : vector<1x32xf32> to vector<8x32xf32>
      %52 = arith.mulf %50, %51 : vector<8x32xf32>
      %53 = vector.broadcast %30 : vector<1x32xf32> to vector<8x32xf32>
      %54 = arith.addf %52, %53 : vector<8x32xf32>
      %55 = arith.truncf %54 : vector<8x32xf32> to vector<8x32xbf16>
      %c0_31 = arith.constant 0 : index
      %c0_32 = arith.constant 0 : index
      %56 = vector.load %arg5[%c0_31, %c0_32] : memref<32x192xbf16, #tpu.memory_space<vmem>>, vector<32x192xbf16>
      %cst_33 = arith.constant dense<0.000000e+00> : vector<8x192xf32>
      %57 = tpu.matmul %55, %56, %cst_33 {dimension_numbers = #tpu.dot_dimension_numbers<[1], [0], [0], [1], [0, 0, 1, 1], [], []>} : vector<8x32xbf16>, vector<32x192xbf16>, vector<8x192xf32> -> vector<8x192xf32>
      %58 = vector.extract_strided_slice %57 {offsets = [0, 0], sizes = [8, 16], strides = [1, 1]} : vector<8x192xf32> to vector<8x16xf32>
      %cst_34 = arith.constant 2.500000e-01 : f32
      %59 = vector.broadcast %cst_34 : f32 to vector<8x16xf32>
      %60 = arith.mulf %58, %59 : vector<8x16xf32>
      %61 = arith.truncf %60 : vector<8x16xf32> to vector<8x16xbf16>
      %c0_35 = arith.constant 0 : index
      %c0_36 = arith.constant 0 : index
      %c0_37 = arith.constant 0 : index
      %62 = vector.load %arg8[%c0_35, %c0_36, %c0_37] : memref<4x8x16xbf16, #tpu.memory_space<vmem>>, vector<1x8x16xbf16>
      %63 = vector.shape_cast %62 : vector<1x8x16xbf16> to vector<8x16xbf16>
      %64 = vector.shape_cast %61 : vector<8x16xbf16> to vector<1x8x16xbf16>
      tpu.vector_store %arg8[%c0_35, %c0_36, %c0_37], %64 {strides = array<i32>} : memref<4x8x16xbf16, #tpu.memory_space<vmem>>, vector<1x8x16xbf16>,
      %65 = vector.extract_strided_slice %57 {offsets = [0, 64], sizes = [8, 16], strides = [1, 1]} : vector<8x192xf32> to vector<8x16xf32>
      %66 = arith.truncf %65 : vector<8x16xf32> to vector<8x16xbf16>
      %c0_38 = arith.constant 0 : index
      %c0_39 = arith.constant 0 : index
      %c0_40 = arith.constant 0 : index
      %67 = vector.load %arg9[%c0_38, %c0_39, %c0_40] : memref<4x8x16xbf16, #tpu.memory_space<vmem>>, vector<1x8x16xbf16>
      %68 = vector.shape_cast %67 : vector<1x8x16xbf16> to vector<8x16xbf16>
      %69 = vector.shape_cast %66 : vector<8x16xbf16> to vector<1x8x16xbf16>
      tpu.vector_store %arg9[%c0_38, %c0_39, %c0_40], %69 {strides = array<i32>} : memref<4x8x16xbf16, #tpu.memory_space<vmem>>, vector<1x8x16xbf16>,
      %70 = vector.extract_strided_slice %57 {offsets = [0, 128], sizes = [8, 16], strides = [1, 1]} : vector<8x192xf32> to vector<8x16xf32>
      %71 = arith.truncf %70 : vector<8x16xf32> to vector<8x16xbf16>
      %c0_41 = arith.constant 0 : index
      %c0_42 = arith.constant 0 : index
      %c0_43 = arith.constant 0 : index
      %72 = vector.load %arg10[%c0_41, %c0_42, %c0_43] : memref<4x8x16xbf16, #tpu.memory_space<vmem>>, vector<1x8x16xbf16>
      %73 = vector.shape_cast %72 : vector<1x8x16xbf16> to vector<8x16xbf16>
      %74 = vector.shape_cast %71 : vector<8x16xbf16> to vector<1x8x16xbf16>
      tpu.vector_store %arg10[%c0_41, %c0_42, %c0_43], %74 {strides = array<i32>} : memref<4x8x16xbf16, #tpu.memory_space<vmem>>, vector<1x8x16xbf16>,
      %75 = vector.extract_strided_slice %57 {offsets = [0, 16], sizes = [8, 16], strides = [1, 1]} : vector<8x192xf32> to vector<8x16xf32>
      %cst_44 = arith.constant 2.500000e-01 : f32
      %76 = vector.broadcast %cst_44 : f32 to vector<8x16xf32>
      %77 = arith.mulf %75, %76 : vector<8x16xf32>
      %78 = arith.truncf %77 : vector<8x16xf32> to vector<8x16xbf16>
      %c1 = arith.constant 1 : index
      %c0_45 = arith.constant 0 : index
      %c0_46 = arith.constant 0 : index
      %79 = vector.load %arg8[%c1, %c0_45, %c0_46] : memref<4x8x16xbf16, #tpu.memory_space<vmem>>, vector<1x8x16xbf16>
      %80 = vector.shape_cast %79 : vector<1x8x16xbf16> to vector<8x16xbf16>
      %81 = vector.shape_cast %78 : vector<8x16xbf16> to vector<1x8x16xbf16>
      tpu.vector_store %arg8[%c1, %c0_45, %c0_46], %81 {strides = array<i32>} : memref<4x8x16xbf16, #tpu.memory_space<vmem>>, vector<1x8x16xbf16>,
      %82 = vector.extract_strided_slice %57 {offsets = [0, 80], sizes = [8, 16], strides = [1, 1]} : vector<8x192xf32> to vector<8x16xf32>
      %83 = arith.truncf %82 : vector<8x16xf32> to vector<8x16xbf16>
      %c1_47 = arith.constant 1 : index
      %c0_48 = arith.constant 0 : index
      %c0_49 = arith.constant 0 : index
      %84 = vector.load %arg9[%c1_47, %c0_48, %c0_49] : memref<4x8x16xbf16, #tpu.memory_space<vmem>>, vector<1x8x16xbf16>
      %85 = vector.shape_cast %84 : vector<1x8x16xbf16> to vector<8x16xbf16>
      %86 = vector.shape_cast %83 : vector<8x16xbf16> to vector<1x8x16xbf16>
      tpu.vector_store %arg9[%c1_47, %c0_48, %c0_49], %86 {strides = array<i32>} : memref<4x8x16xbf16, #tpu.memory_space<vmem>>, vector<1x8x16xbf16>,
      %87 = vector.extract_strided_slice %57 {offsets = [0, 144], sizes = [8, 16], strides = [1, 1]} : vector<8x192xf32> to vector<8x16xf32>
      %88 = arith.truncf %87 : vector<8x16xf32> to vector<8x16xbf16>
      %c1_50 = arith.constant 1 : index
      %c0_51 = arith.constant 0 : index
      %c0_52 = arith.constant 0 : index
      %89 = vector.load %arg10[%c1_50, %c0_51, %c0_52] : memref<4x8x16xbf16, #tpu.memory_space<vmem>>, vector<1x8x16xbf16>
      %90 = vector.shape_cast %89 : vector<1x8x16xbf16> to vector<8x16xbf16>
      %91 = vector.shape_cast %88 : vector<8x16xbf16> to vector<1x8x16xbf16>
      tpu.vector_store %arg10[%c1_50, %c0_51, %c0_52], %91 {strides = array<i32>} : memref<4x8x16xbf16, #tpu.memory_space<vmem>>, vector<1x8x16xbf16>,
      %92 = vector.extract_strided_slice %57 {offsets = [0, 32], sizes = [8, 16], strides = [1, 1]} : vector<8x192xf32> to vector<8x16xf32>
      %cst_53 = arith.constant 2.500000e-01 : f32
      %93 = vector.broadcast %cst_53 : f32 to vector<8x16xf32>
      %94 = arith.mulf %92, %93 : vector<8x16xf32>
      %95 = arith.truncf %94 : vector<8x16xf32> to vector<8x16xbf16>
      %c2 = arith.constant 2 : index
      %c0_54 = arith.constant 0 : index
      %c0_55 = arith.constant 0 : index
      %96 = vector.load %arg8[%c2, %c0_54, %c0_55] : memref<4x8x16xbf16, #tpu.memory_space<vmem>>, vector<1x8x16xbf16>
      %97 = vector.shape_cast %96 : vector<1x8x16xbf16> to vector<8x16xbf16>
      %98 = vector.shape_cast %95 : vector<8x16xbf16> to vector<1x8x16xbf16>
      tpu.vector_store %arg8[%c2, %c0_54, %c0_55], %98 {strides = array<i32>} : memref<4x8x16xbf16, #tpu.memory_space<vmem>>, vector<1x8x16xbf16>,
      %99 = vector.extract_strided_slice %57 {offsets = [0, 96], sizes = [8, 16], strides = [1, 1]} : vector<8x192xf32> to vector<8x16xf32>
      %100 = arith.truncf %99 : vector<8x16xf32> to vector<8x16xbf16>
      %c2_56 = arith.constant 2 : index
      %c0_57 = arith.constant 0 : index
      %c0_58 = arith.constant 0 : index
      %101 = vector.load %arg9[%c2_56, %c0_57, %c0_58] : memref<4x8x16xbf16, #tpu.memory_space<vmem>>, vector<1x8x16xbf16>
      %102 = vector.shape_cast %101 : vector<1x8x16xbf16> to vector<8x16xbf16>
      %103 = vector.shape_cast %100 : vector<8x16xbf16> to vector<1x8x16xbf16>
      tpu.vector_store %arg9[%c2_56, %c0_57, %c0_58], %103 {strides = array<i32>} : memref<4x8x16xbf16, #tpu.memory_space<vmem>>, vector<1x8x16xbf16>,
      %104 = vector.extract_strided_slice %57 {offsets = [0, 160], sizes = [8, 16], strides = [1, 1]} : vector<8x192xf32> to vector<8x16xf32>
      %105 = arith.truncf %104 : vector<8x16xf32> to vector<8x16xbf16>
      %c2_59 = arith.constant 2 : index
      %c0_60 = arith.constant 0 : index
      %c0_61 = arith.constant 0 : index
      %106 = vector.load %arg10[%c2_59, %c0_60, %c0_61] : memref<4x8x16xbf16, #tpu.memory_space<vmem>>, vector<1x8x16xbf16>
      %107 = vector.shape_cast %106 : vector<1x8x16xbf16> to vector<8x16xbf16>
      %108 = vector.shape_cast %105 : vector<8x16xbf16> to vector<1x8x16xbf16>
      tpu.vector_store %arg10[%c2_59, %c0_60, %c0_61], %108 {strides = array<i32>} : memref<4x8x16xbf16, #tpu.memory_space<vmem>>, vector<1x8x16xbf16>,
      %109 = vector.extract_strided_slice %57 {offsets = [0, 48], sizes = [8, 16], strides = [1, 1]} : vector<8x192xf32> to vector<8x16xf32>
      %cst_62 = arith.constant 2.500000e-01 : f32
      %110 = vector.broadcast %cst_62 : f32 to vector<8x16xf32>
      %111 = arith.mulf %109, %110 : vector<8x16xf32>
      %112 = arith.truncf %111 : vector<8x16xf32> to vector<8x16xbf16>
      %c3 = arith.constant 3 : index
      %c0_63 = arith.constant 0 : index
      %c0_64 = arith.constant 0 : index
      %113 = vector.load %arg8[%c3, %c0_63, %c0_64] : memref<4x8x16xbf16, #tpu.memory_space<vmem>>, vector<1x8x16xbf16>
      %114 = vector.shape_cast %113 : vector<1x8x16xbf16> to vector<8x16xbf16>
      %115 = vector.shape_cast %112 : vector<8x16xbf16> to vector<1x8x16xbf16>
      tpu.vector_store %arg8[%c3, %c0_63, %c0_64], %115 {strides = array<i32>} : memref<4x8x16xbf16, #tpu.memory_space<vmem>>, vector<1x8x16xbf16>,
      %116 = vector.extract_strided_slice %57 {offsets = [0, 112], sizes = [8, 16], strides = [1, 1]} : vector<8x192xf32> to vector<8x16xf32>
      %117 = arith.truncf %116 : vector<8x16xf32> to vector<8x16xbf16>
      %c3_65 = arith.constant 3 : index
      %c0_66 = arith.constant 0 : index
      %c0_67 = arith.constant 0 : index
      %118 = vector.load %arg9[%c3_65, %c0_66, %c0_67] : memref<4x8x16xbf16, #tpu.memory_space<vmem>>, vector<1x8x16xbf16>
      %119 = vector.shape_cast %118 : vector<1x8x16xbf16> to vector<8x16xbf16>
      %120 = vector.shape_cast %117 : vector<8x16xbf16> to vector<1x8x16xbf16>
      tpu.vector_store %arg9[%c3_65, %c0_66, %c0_67], %120 {strides = array<i32>} : memref<4x8x16xbf16, #tpu.memory_space<vmem>>, vector<1x8x16xbf16>,
      %121 = vector.extract_strided_slice %57 {offsets = [0, 176], sizes = [8, 16], strides = [1, 1]} : vector<8x192xf32> to vector<8x16xf32>
      %122 = arith.truncf %121 : vector<8x16xf32> to vector<8x16xbf16>
      %c3_68 = arith.constant 3 : index
      %c0_69 = arith.constant 0 : index
      %c0_70 = arith.constant 0 : index
      %123 = vector.load %arg10[%c3_68, %c0_69, %c0_70] : memref<4x8x16xbf16, #tpu.memory_space<vmem>>, vector<1x8x16xbf16>
      %124 = vector.shape_cast %123 : vector<1x8x16xbf16> to vector<8x16xbf16>
      %125 = vector.shape_cast %122 : vector<8x16xbf16> to vector<1x8x16xbf16>
      tpu.vector_store %arg10[%c3_68, %c0_69, %c0_70], %125 {strides = array<i32>} : memref<4x8x16xbf16, #tpu.memory_space<vmem>>, vector<1x8x16xbf16>,
    } else {
    }
    %c8_i32 = arith.constant 8 : i32
    %3 = arith.muli %arg1, %c8_i32 : i32
    %4 = tpu.assume_multiple %3, 8 : i32
    %c0 = arith.constant 0 : index
    %5 = arith.index_cast %4 : i32 to index
    %c0_1 = arith.constant 0 : index
    %6 = vector.load %arg8[%c0, %5, %c0_1] : memref<4x8x16xbf16, #tpu.memory_space<vmem>>, vector<4x8x16xbf16>
    %c0_2 = arith.constant 0 : index
    %c0_3 = arith.constant 0 : index
    %c0_4 = arith.constant 0 : index
    %7 = vector.load %arg9[%c0_2, %c0_3, %c0_4] : memref<4x8x16xbf16, #tpu.memory_space<vmem>>, vector<4x8x16xbf16>
    %c0_5 = arith.constant 0 : index
    %c0_6 = arith.constant 0 : index
    %c0_7 = arith.constant 0 : index
    %8 = vector.load %arg10[%c0_5, %c0_6, %c0_7] : memref<4x8x16xbf16, #tpu.memory_space<vmem>>, vector<4x8x16xbf16>
    "tpu.trace_start"() <{level = 10 : i32, message = "hqd,hkd->hqk"}> : () -> ()
    %cst = arith.constant dense<0.000000e+00> : vector<4x8x8xf32>
    %9 = tpu.matmul %6, %7, %cst {dimension_numbers = #tpu.dot_dimension_numbers<[2], [2], [1], [1], [0, 0, 0, 1, 1, 1], [0], [0]>} : vector<4x8x16xbf16>, vector<4x8x16xbf16>, vector<4x8x8xf32> -> vector<4x8x8xf32>
    "tpu.trace_stop"() : () -> ()
    %cst_8 = arith.constant dense<0xFF800000> : vector<4x8xf32>
    %10 = vector.multi_reduction <maximumf>, %9, %cst_8 [2] : vector<4x8x8xf32> to vector<4x8xf32>
    %11 = vector.shape_cast %10 : vector<4x8xf32> to vector<4x8x1xf32>
    %12 = vector.broadcast %11 : vector<4x8x1xf32> to vector<4x8x8xf32>
    %13 = arith.subf %9, %12 : vector<4x8x8xf32>
    %14 = math.exp %13 : vector<4x8x8xf32>
    %cst_9 = arith.constant dense<0.000000e+00> : vector<4x8xf32>
    %15 = vector.multi_reduction <add>, %14, %cst_9 [2] : vector<4x8x8xf32> to vector<4x8xf32>
    %16 = vector.shape_cast %15 : vector<4x8xf32> to vector<4x8x1xf32>
    %17 = tpu.reciprocal %16 {approx = true} : vector<4x8x1xf32> -> vector<4x8x1xf32>
    %18 = vector.broadcast %17 : vector<4x8x1xf32> to vector<4x8x8xf32>
    %19 = arith.mulf %14, %18 : vector<4x8x8xf32>
    %20 = arith.truncf %19 : vector<4x8x8xf32> to vector<4x8x8xbf16>
    "tpu.trace_start"() <{level = 10 : i32, message = "hqk,hkd->hqd"}> : () -> ()
    %cst_10 = arith.constant dense<0.000000e+00> : vector<4x8x16xf32>
    %21 = tpu.matmul %20, %8, %cst_10 {dimension_numbers = #tpu.dot_dimension_numbers<[2], [1], [1], [2], [0, 0, 0, 1, 1, 2], [0], [0]>} : vector<4x8x8xbf16>, vector<4x8x16xbf16>, vector<4x8x16xf32> -> vector<4x8x16xf32>
    "tpu.trace_stop"() : () -> ()
    %22 = arith.truncf %21 : vector<4x8x16xf32> to vector<4x8x16xbf16>
    %c0_11 = arith.constant 0 : index
    %c0_12 = arith.constant 0 : index
    %c0_13 = arith.constant 0 : index
    %23 = vector.load %arg6[%c0_11, %c0_12, %c0_13] : memref<4x16x32xbf16, #tpu.memory_space<vmem>>, vector<4x16x32xbf16>
    "tpu.trace_start"() <{level = 10 : i32, message = "hqd,hde->hqe"}> : () -> ()
    %cst_14 = arith.constant dense<0.000000e+00> : vector<4x8x32xf32>
    %24 = tpu.matmul %22, %23, %cst_14 {dimension_numbers = #tpu.dot_dimension_numbers<[2], [1], [1], [2], [0, 0, 0, 1, 1, 2], [0], [0]>} : vector<4x8x16xbf16>, vector<4x16x32xbf16>, vector<4x8x32xf32> -> vector<4x8x32xf32>
    "tpu.trace_stop"() : () -> ()
    %cst_15 = arith.constant dense<0.000000e+00> : vector<8x32xf32>
    %25 = vector.multi_reduction <add>, %24, %cst_15 [0] : vector<4x8x32xf32> to vector<8x32xf32>
    %c0_16 = arith.constant 0 : index
    %c0_17 = arith.constant 0 : index
    %c0_18 = arith.constant 0 : index
    %26 = vector.load %arg7[%c0_16, %c0_17, %c0_18] : memref<1x8x32xf32, #tpu.memory_space<vmem>>, vector<1x8x32xf32>
    %27 = vector.shape_cast %26 : vector<1x8x32xf32> to vector<8x32xf32>
    %28 = vector.shape_cast %25 : vector<8x32xf32> to vector<1x8x32xf32>
    tpu.vector_store %arg7[%c0_16, %c0_17, %c0_18], %28 {strides = array<i32>} : memref<1x8x32xf32, #tpu.memory_space<vmem>>, vector<1x8x32xf32>,
    return
  }
  func.func @transform_0(%arg0: i32, %arg1: i32) -> (i32, i32, i32) {
    %c0_i32 = arith.constant 0 : i32
    %c0_i32_0 = arith.constant 0 : i32
    %c0_i32_1 = arith.constant 0 : i32
    return %arg0, %c0_i32, %c0_i32_0 : i32, i32, i32
  }
  func.func @transform_1(%arg0: i32, %arg1: i32) -> (i32, i32) {
    %c0_i32 = arith.constant 0 : i32
    %c0_i32_0 = arith.constant 0 : i32
    %c0_i32_1 = arith.constant 0 : i32
    return %c0_i32, %c0_i32_0 : i32, i32
  }
  func.func @transform_2(%arg0: i32, %arg1: i32) -> (i32, i32) {
    %c0_i32 = arith.constant 0 : i32
    %c0_i32_0 = arith.constant 0 : i32
    %c0_i32_1 = arith.constant 0 : i32
    return %c0_i32, %c0_i32_0 : i32, i32
  }
  func.func @transform_3(%arg0: i32, %arg1: i32) -> (i32, i32) {
    %c0_i32 = arith.constant 0 : i32
    %c0_i32_0 = arith.constant 0 : i32
    %c0_i32_1 = arith.constant 0 : i32
    return %c0_i32, %c0_i32_0 : i32, i32
  }
  func.func @transform_4(%arg0: i32, %arg1: i32) -> (i32, i32, i32) {
    %c0_i32 = arith.constant 0 : i32
    %c0_i32_0 = arith.constant 0 : i32
    %c0_i32_1 = arith.constant 0 : i32
    %c0_i32_2 = arith.constant 0 : i32
    return %c0_i32, %c0_i32_0, %c0_i32_1 : i32, i32, i32
  }
  func.func @transform_5(%arg0: i32, %arg1: i32) -> (i32, i32, i32) {
    %c0_i32 = arith.constant 0 : i32
    %c0_i32_0 = arith.constant 0 : i32
    return %arg0, %arg1, %c0_i32 : i32, i32, i32
  }
}

module attributes {stable_mosaic.version = 11 : i64} {
  func.func @_attention_kernel(%arg0: i32, %arg1: i32, %arg2: memref<1x8x32xf32, #tpu.memory_space<vmem>>, %arg3: memref<1x32xf32, #tpu.memory_space<vmem>>, %arg4: memref<1x32xf32, #tpu.memory_space<vmem>>, %arg5: memref<32x192xbf16, #tpu.memory_space<vmem>>, %arg6: memref<4x16x32xbf16, #tpu.memory_space<vmem>>, %arg7: memref<1x8x32xf32, #tpu.memory_space<vmem>>, %arg8: memref<4x8x16xbf16, #tpu.memory_space<vmem>>, %arg9: memref<4x8x16xbf16, #tpu.memory_space<vmem>>, %arg10: memref<4x8x16xbf16, #tpu.memory_space<vmem>>) attributes {dimension_semantics = [#tpu.dimension_semantics<parallel>, #tpu.dimension_semantics<arbitrary>], iteration_bounds = array<i64: 2, 1>, scalar_prefetch = 0 : i64, scratch_operands = 3 : i64, tpu.core_type = #tpu.core_type<tc>, window_params = [{transform_indices = @transform_0, window_bounds = array<i64: 1, 8, 32>}, {pipeline_mode = #tpu.pipeline_mode<synchronous>, transform_indices = @transform_1, window_bounds = array<i64: 1, 32>}, {pipeline_mode = #tpu.pipeline_mode<synchronous>, transform_indices = @transform_2, window_bounds = array<i64: 1, 32>}, {pipeline_mode = #tpu.pipeline_mode<synchronous>, transform_indices = @transform_3, window_bounds = array<i64: 32, 192>}, {pipeline_mode = #tpu.pipeline_mode<synchronous>, transform_indices = @transform_4, window_bounds = array<i64: 4, 16, 32>}, {transform_indices = @transform_5, window_bounds = array<i64: 1, 8, 32>}]} {
    %c0_i32 = arith.constant 0 : i32
    %0 = arith.cmpi eq, %arg1, %c0_i32 : i32
    %1 = arith.extui %0 : i1 to i32
    %c0_i32_0 = arith.constant 0 : i32
    %2 = arith.cmpi ne, %1, %c0_i32_0 : i32
    scf.if %2 {
      %c0_19 = arith.constant 0 : index
      %c0_20 = arith.constant 0 : index
      %29 = vector.load %arg3[%c0_19, %c0_20] : memref<1x32xf32, #tpu.memory_space<vmem>>, vector<1x32xf32>
      %c0_21 = arith.constant 0 : index
      %c0_22 = arith.constant 0 : index
      %30 = vector.load %arg4[%c0_21, %c0_22] : memref<1x32xf32, #tpu.memory_space<vmem>>, vector<1x32xf32>
      %c0_23 = arith.constant 0 : index
      %c0_24 = arith.constant 0 : index
      %c0_25 = arith.constant 0 : index
      %31 = vector.load %arg2[%c0_23, %c0_24, %c0_25] : memref<1x8x32xf32, #tpu.memory_space<vmem>>, vector<1x8x32xf32>
      %32 = vector.shape_cast %31 : vector<1x8x32xf32> to vector<8x32xf32>
      %cst_26 = arith.constant dense<0.000000e+00> : vector<8xf32>
      %33 = vector.multi_reduction <add>, %32, %cst_26 [1] : vector<8x32xf32> to vector<8xf32>
      %34 = vector.shape_cast %33 : vector<8xf32> to vector<8x1xf32>
      %cst_27 = arith.constant 3.200000e+01 : f32
      %35 = vector.broadcast %cst_27 : f32 to vector<8x1xf32>
      %36 = arith.divf %34, %35 : vector<8x1xf32>
      %37 = vector.broadcast %36 : vector<8x1xf32> to vector<8x32xf32>
      %38 = arith.subf %32, %37 : vector<8x32xf32>
      %39 = arith.mulf %38, %38 : vector<8x32xf32>
      %cst_28 = arith.constant dense<0.000000e+00> : vector<8xf32>
      %40 = vector.multi_reduction <add>, %39, %cst_28 [1] : vector<8x32xf32> to vector<8xf32>
      %41 = vector.shape_cast %40 : vector<8xf32> to vector<8x1xf32>
      %cst_29 = arith.constant 3.200000e+01 : f32
      %42 = vector.broadcast %cst_29 : f32 to vector<8x1xf32>
      %43 = arith.divf %41, %42 : vector<8x1xf32>
      %44 = vector.broadcast %36 : vector<8x1xf32> to vector<8x32xf32>
      %45 = arith.subf %32, %44 : vector<8x32xf32>
      %cst_30 = arith.constant 9.99999974E-6 : f32
      %46 = vector.broadcast %cst_30 : f32 to vector<8x1xf32>
      %47 = arith.addf %43, %46 : vector<8x1xf32>
      %48 = math.rsqrt %47 : vector<8x1xf32>
      %49 = vector.broadcast %48 : vector<8x1xf32> to vector<8x32xf32>
      %50 = arith.mulf %45, %49 : vector<8x32xf32>
      %51 = vector.broadcast %29 : vector<1x32xf32> to vector<8x32xf32>
      %52 = arith.mulf %50, %51 : vector<8x32xf32>
      %53 = vector.broadcast %30 : vector<1x32xf32> to vector<8x32xf32>
      %54 = arith.addf %52, %53 : vector<8x32xf32>
      %55 = arith.truncf %54 : vector<8x32xf32> to vector<8x32xbf16>
      %c0_31 = arith.constant 0 : index
      %c0_32 = arith.constant 0 : index
      %56 = vector.load %arg5[%c0_31, %c0_32] : memref<32x192xbf16, #tpu.memory_space<vmem>>, vector<32x192xbf16>
      %cst_33 = arith.constant dense<0.000000e+00> : vector<8x192xf32>
      %57 = tpu.matmul %55, %56, %cst_33 {dimension_numbers = #tpu.dot_dimension_numbers<[1], [0], [0], [1], [0, 0, 1, 1], [], []>} : vector<8x32xbf16>, vector<32x192xbf16>, vector<8x192xf32> -> vector<8x192xf32>
      %58 = vector.extract_strided_slice %57 {offsets = [0, 0], sizes = [8, 16], strides = [1, 1]} : vector<8x192xf32> to vector<8x16xf32>
      %cst_34 = arith.constant 2.500000e-01 : f32
      %59 = vector.broadcast %cst_34 : f32 to vector<8x16xf32>
      %60 = arith.mulf %58, %59 : vector<8x16xf32>
      %61 = arith.truncf %60 : vector<8x16xf32> to vector<8x16xbf16>
      %c0_35 = arith.constant 0 : index
      %c0_36 = arith.constant 0 : index
      %c0_37 = arith.constant 0 : index
      %62 = vector.load %arg8[%c0_35, %c0_36, %c0_37] : memref<4x8x16xbf16, #tpu.memory_space<vmem>>, vector<1x8x16xbf16>
      %63 = vector.shape_cast %62 : vector<1x8x16xbf16> to vector<8x16xbf16>
      %64 = vector.shape_cast %61 : vector<8x16xbf16> to vector<1x8x16xbf16>
      tpu.vector_store %arg8[%c0_35, %c0_36, %c0_37], %64 {strides = array<i32>} : memref<4x8x16xbf16, #tpu.memory_space<vmem>>, vector<1x8x16xbf16>,
      %65 = vector.extract_strided_slice %57 {offsets = [0, 64], sizes = [8, 16], strides = [1, 1]} : vector<8x192xf32> to vector<8x16xf32>
      %66 = arith.truncf %65 : vector<8x16xf32> to vector<8x16xbf16>
      %c0_38 = arith.constant 0 : index
      %c0_39 = arith.constant 0 : index
      %c0_40 = arith.constant 0 : index
      %67 = vector.load %arg9[%c0_38, %c0_39, %c0_40] : memref<4x8x16xbf16, #tpu.memory_space<vmem>>, vector<1x8x16xbf16>
      %68 = vector.shape_cast %67 : vector<1x8x16xbf16> to vector<8x16xbf16>
      %69 = vector.shape_cast %66 : vector<8x16xbf16> to vector<1x8x16xbf16>
      tpu.vector_store %arg9[%c0_38, %c0_39, %c0_40], %69 {strides = array<i32>} : memref<4x8x16xbf16, #tpu.memory_space<vmem>>, vector<1x8x16xbf16>,
      %70 = vector.extract_strided_slice %57 {offsets = [0, 128], sizes = [8, 16], strides = [1, 1]} : vector<8x192xf32> to vector<8x16xf32>
      %71 = arith.truncf %70 : vector<8x16xf32> to vector<8x16xbf16>
      %c0_41 = arith.constant 0 : index
      %c0_42 = arith.constant 0 : index
      %c0_43 = arith.constant 0 : index
      %72 = vector.load %arg10[%c0_41, %c0_42, %c0_43] : memref<4x8x16xbf16, #tpu.memory_space<vmem>>, vector<1x8x16xbf16>
      %73 = vector.shape_cast %72 : vector<1x8x16xbf16> to vector<8x16xbf16>
      %74 = vector.shape_cast %71 : vector<8x16xbf16> to vector<1x8x16xbf16>
      tpu.vector_store %arg10[%c0_41, %c0_42, %c0_43], %74 {strides = array<i32>} : memref<4x8x16xbf16, #tpu.memory_space<vmem>>, vector<1x8x16xbf16>,
      %75 = vector.extract_strided_slice %57 {offsets = [0, 16], sizes = [8, 16], strides = [1, 1]} : vector<8x192xf32> to vector<8x16xf32>
      %cst_44 = arith.constant 2.500000e-01 : f32
      %76 = vector.broadcast %cst_44 : f32 to vector<8x16xf32>
      %77 = arith.mulf %75, %76 : vector<8x16xf32>
      %78 = arith.truncf %77 : vector<8x16xf32> to vector<8x16xbf16>
      %c1 = arith.constant 1 : index
      %c0_45 = arith.constant 0 : index
      %c0_46 = arith.constant 0 : index
      %79 = vector.load %arg8[%c1, %c0_45, %c0_46] : memref<4x8x16xbf16, #tpu.memory_space<vmem>>, vector<1x8x16xbf16>
      %80 = vector.shape_cast %79 : vector<1x8x16xbf16> to vector<8x16xbf16>
      %81 = vector.shape_cast %78 : vector<8x16xbf16> to vector<1x8x16xbf16>
      tpu.vector_store %arg8[%c1, %c0_45, %c0_46], %81 {strides = array<i32>} : memref<4x8x16xbf16, #tpu.memory_space<vmem>>, vector<1x8x16xbf16>,
      %82 = vector.extract_strided_slice %57 {offsets = [0, 80], sizes = [8, 16], strides = [1, 1]} : vector<8x192xf32> to vector<8x16xf32>
      %83 = arith.truncf %82 : vector<8x16xf32> to vector<8x16xbf16>
      %c1_47 = arith.constant 1 : index
      %c0_48 = arith.constant 0 : index
      %c0_49 = arith.constant 0 : index
      %84 = vector.load %arg9[%c1_47, %c0_48, %c0_49] : memref<4x8x16xbf16, #tpu.memory_space<vmem>>, vector<1x8x16xbf16>
      %85 = vector.shape_cast %84 : vector<1x8x16xbf16> to vector<8x16xbf16>
      %86 = vector.shape_cast %83 : vector<8x16xbf16> to vector<1x8x16xbf16>
      tpu.vector_store %arg9[%c1_47, %c0_48, %c0_49], %86 {strides = array<i32>} : memref<4x8x16xbf16, #tpu.memory_space<vmem>>, vector<1x8x16xbf16>,
      %87 = vector.extract_strided_slice %57 {offsets = [0, 144], sizes = [8, 16], strides = [1, 1]} : vector<8x192xf32> to vector<8x16xf32>
      %88 = arith.truncf %87 : vector<8x16xf32> to vector<8x16xbf16>
      %c1_50 = arith.constant 1 : index
      %c0_51 = arith.constant 0 : index
      %c0_52 = arith.constant 0 : index
      %89 = vector.load %arg10[%c1_50, %c0_51, %c0_52] : memref<4x8x16xbf16, #tpu.memory_space<vmem>>, vector<1x8x16xbf16>
      %90 = vector.shape_cast %89 : vector<1x8x16xbf16> to vector<8x16xbf16>
      %91 = vector.shape_cast %88 : vector<8x16xbf16> to vector<1x8x16xbf16>
      tpu.vector_store %arg10[%c1_50, %c0_51, %c0_52], %91 {strides = array<i32>} : memref<4x8x16xbf16, #tpu.memory_space<vmem>>, vector<1x8x16xbf16>,
      %92 = vector.extract_strided_slice %57 {offsets = [0, 32], sizes = [8, 16], strides = [1, 1]} : vector<8x192xf32> to vector<8x16xf32>
      %cst_53 = arith.constant 2.500000e-01 : f32
      %93 = vector.broadcast %cst_53 : f32 to vector<8x16xf32>
      %94 = arith.mulf %92, %93 : vector<8x16xf32>
      %95 = arith.truncf %94 : vector<8x16xf32> to vector<8x16xbf16>
      %c2 = arith.constant 2 : index
      %c0_54 = arith.constant 0 : index
      %c0_55 = arith.constant 0 : index
      %96 = vector.load %arg8[%c2, %c0_54, %c0_55] : memref<4x8x16xbf16, #tpu.memory_space<vmem>>, vector<1x8x16xbf16>
      %97 = vector.shape_cast %96 : vector<1x8x16xbf16> to vector<8x16xbf16>
      %98 = vector.shape_cast %95 : vector<8x16xbf16> to vector<1x8x16xbf16>
      tpu.vector_store %arg8[%c2, %c0_54, %c0_55], %98 {strides = array<i32>} : memref<4x8x16xbf16, #tpu.memory_space<vmem>>, vector<1x8x16xbf16>,
      %99 = vector.extract_strided_slice %57 {offsets = [0, 96], sizes = [8, 16], strides = [1, 1]} : vector<8x192xf32> to vector<8x16xf32>
      %100 = arith.truncf %99 : vector<8x16xf32> to vector<8x16xbf16>
      %c2_56 = arith.constant 2 : index
      %c0_57 = arith.constant 0 : index
      %c0_58 = arith.constant 0 : index
      %101 = vector.load %arg9[%c2_56, %c0_57, %c0_58] : memref<4x8x16xbf16, #tpu.memory_space<vmem>>, vector<1x8x16xbf16>
      %102 = vector.shape_cast %101 : vector<1x8x16xbf16> to vector<8x16xbf16>
      %103 = vector.shape_cast %100 : vector<8x16xbf16> to vector<1x8x16xbf16>
      tpu.vector_store %arg9[%c2_56, %c0_57, %c0_58], %103 {strides = array<i32>} : memref<4x8x16xbf16, #tpu.memory_space<vmem>>, vector<1x8x16xbf16>,
      %104 = vector.extract_strided_slice %57 {offsets = [0, 160], sizes = [8, 16], strides = [1, 1]} : vector<8x192xf32> to vector<8x16xf32>
      %105 = arith.truncf %104 : vector<8x16xf32> to vector<8x16xbf16>
      %c2_59 = arith.constant 2 : index
      %c0_60 = arith.constant 0 : index
      %c0_61 = arith.constant 0 : index
      %106 = vector.load %arg10[%c2_59, %c0_60, %c0_61] : memref<4x8x16xbf16, #tpu.memory_space<vmem>>, vector<1x8x16xbf16>
      %107 = vector.shape_cast %106 : vector<1x8x16xbf16> to vector<8x16xbf16>
      %108 = vector.shape_cast %105 : vector<8x16xbf16> to vector<1x8x16xbf16>
      tpu.vector_store %arg10[%c2_59, %c0_60, %c0_61], %108 {strides = array<i32>} : memref<4x8x16xbf16, #tpu.memory_space<vmem>>, vector<1x8x16xbf16>,
      %109 = vector.extract_strided_slice %57 {offsets = [0, 48], sizes = [8, 16], strides = [1, 1]} : vector<8x192xf32> to vector<8x16xf32>
      %cst_62 = arith.constant 2.500000e-01 : f32
      %110 = vector.broadcast %cst_62 : f32 to vector<8x16xf32>
      %111 = arith.mulf %109, %110 : vector<8x16xf32>
      %112 = arith.truncf %111 : vector<8x16xf32> to vector<8x16xbf16>
      %c3 = arith.constant 3 : index
      %c0_63 = arith.constant 0 : index
      %c0_64 = arith.constant 0 : index
      %113 = vector.load %arg8[%c3, %c0_63, %c0_64] : memref<4x8x16xbf16, #tpu.memory_space<vmem>>, vector<1x8x16xbf16>
      %114 = vector.shape_cast %113 : vector<1x8x16xbf16> to vector<8x16xbf16>
      %115 = vector.shape_cast %112 : vector<8x16xbf16> to vector<1x8x16xbf16>
      tpu.vector_store %arg8[%c3, %c0_63, %c0_64], %115 {strides = array<i32>} : memref<4x8x16xbf16, #tpu.memory_space<vmem>>, vector<1x8x16xbf16>,
      %116 = vector.extract_strided_slice %57 {offsets = [0, 112], sizes = [8, 16], strides = [1, 1]} : vector<8x192xf32> to vector<8x16xf32>
      %117 = arith.truncf %116 : vector<8x16xf32> to vector<8x16xbf16>
      %c3_65 = arith.constant 3 : index
      %c0_66 = arith.constant 0 : index
      %c0_67 = arith.constant 0 : index
      %118 = vector.load %arg9[%c3_65, %c0_66, %c0_67] : memref<4x8x16xbf16, #tpu.memory_space<vmem>>, vector<1x8x16xbf16>
      %119 = vector.shape_cast %118 : vector<1x8x16xbf16> to vector<8x16xbf16>
      %120 = vector.shape_cast %117 : vector<8x16xbf16> to vector<1x8x16xbf16>
      tpu.vector_store %arg9[%c3_65, %c0_66, %c0_67], %120 {strides = array<i32>} : memref<4x8x16xbf16, #tpu.memory_space<vmem>>, vector<1x8x16xbf16>,
      %121 = vector.extract_strided_slice %57 {offsets = [0, 176], sizes = [8, 16], strides = [1, 1]} : vector<8x192xf32> to vector<8x16xf32>
      %122 = arith.truncf %121 : vector<8x16xf32> to vector<8x16xbf16>
      %c3_68 = arith.constant 3 : index
      %c0_69 = arith.constant 0 : index
      %c0_70 = arith.constant 0 : index
      %123 = vector.load %arg10[%c3_68, %c0_69, %c0_70] : memref<4x8x16xbf16, #tpu.memory_space<vmem>>, vector<1x8x16xbf16>
      %124 = vector.shape_cast %123 : vector<1x8x16xbf16> to vector<8x16xbf16>
      %125 = vector.shape_cast %122 : vector<8x16xbf16> to vector<1x8x16xbf16>
      tpu.vector_store %arg10[%c3_68, %c0_69, %c0_70], %125 {strides = array<i32>} : memref<4x8x16xbf16, #tpu.memory_space<vmem>>, vector<1x8x16xbf16>,
    } else {
    }
    %c8_i32 = arith.constant 8 : i32
    %3 = arith.muli %arg1, %c8_i32 : i32
    %4 = tpu.assume_multiple %3, 8 : i32
    %c0 = arith.constant 0 : index
    %5 = arith.index_cast %4 : i32 to index
    %c0_1 = arith.constant 0 : index
    %6 = vector.load %arg8[%c0, %5, %c0_1] : memref<4x8x16xbf16, #tpu.memory_space<vmem>>, vector<4x8x16xbf16>
    %c0_2 = arith.constant 0 : index
    %c0_3 = arith.constant 0 : index
    %c0_4 = arith.constant 0 : index
    %7 = vector.load %arg9[%c0_2, %c0_3, %c0_4] : memref<4x8x16xbf16, #tpu.memory_space<vmem>>, vector<4x8x16xbf16>
    %c0_5 = arith.constant 0 : index
    %c0_6 = arith.constant 0 : index
    %c0_7 = arith.constant 0 : index
    %8 = vector.load %arg10[%c0_5, %c0_6, %c0_7] : memref<4x8x16xbf16, #tpu.memory_space<vmem>>, vector<4x8x16xbf16>
    "tpu.trace_start"() <{level = 10 : i32, message = "hqd,hkd->hqk"}> : () -> ()
    %cst = arith.constant dense<0.000000e+00> : vector<4x8x8xf32>
    %9 = tpu.matmul %6, %7, %cst {dimension_numbers = #tpu.dot_dimension_numbers<[2], [2], [1], [1], [0, 0, 0, 1, 1, 1], [0], [0]>} : vector<4x8x16xbf16>, vector<4x8x16xbf16>, vector<4x8x8xf32> -> vector<4x8x8xf32>
    "tpu.trace_stop"() : () -> ()
    %cst_8 = arith.constant dense<0xFF800000> : vector<4x8xf32>
    %10 = vector.multi_reduction <maximumf>, %9, %cst_8 [2] : vector<4x8x8xf32> to vector<4x8xf32>
    %11 = vector.shape_cast %10 : vector<4x8xf32> to vector<4x8x1xf32>
    %12 = vector.broadcast %11 : vector<4x8x1xf32> to vector<4x8x8xf32>
    %13 = arith.subf %9, %12 : vector<4x8x8xf32>
    %14 = math.exp %13 : vector<4x8x8xf32>
    %cst_9 = arith.constant dense<0.000000e+00> : vector<4x8xf32>
    %15 = vector.multi_reduction <add>, %14, %cst_9 [2] : vector<4x8x8xf32> to vector<4x8xf32>
    %16 = vector.shape_cast %15 : vector<4x8xf32> to vector<4x8x1xf32>
    %17 = tpu.reciprocal %16 {approx = true} : vector<4x8x1xf32> -> vector<4x8x1xf32>
    %18 = vector.broadcast %17 : vector<4x8x1xf32> to vector<4x8x8xf32>
    %19 = arith.mulf %14, %18 : vector<4x8x8xf32>
    %20 = arith.truncf %19 : vector<4x8x8xf32> to vector<4x8x8xbf16>
    "tpu.trace_start"() <{level = 10 : i32, message = "hqk,hkd->hqd"}> : () -> ()
    %cst_10 = arith.constant dense<0.000000e+00> : vector<4x8x16xf32>
    %21 = tpu.matmul %20, %8, %cst_10 {dimension_numbers = #tpu.dot_dimension_numbers<[2], [1], [1], [2], [0, 0, 0, 1, 1, 2], [0], [0]>} : vector<4x8x8xbf16>, vector<4x8x16xbf16>, vector<4x8x16xf32> -> vector<4x8x16xf32>
    "tpu.trace_stop"() : () -> ()
    %22 = arith.truncf %21 : vector<4x8x16xf32> to vector<4x8x16xbf16>
    %c0_11 = arith.constant 0 : index
    %c0_12 = arith.constant 0 : index
    %c0_13 = arith.constant 0 : index
    %23 = vector.load %arg6[%c0_11, %c0_12, %c0_13] : memref<4x16x32xbf16, #tpu.memory_space<vmem>>, vector<4x16x32xbf16>
    "tpu.trace_start"() <{level = 10 : i32, message = "hqd,hde->hqe"}> : () -> ()
    %cst_14 = arith.constant dense<0.000000e+00> : vector<4x8x32xf32>
    %24 = tpu.matmul %22, %23, %cst_14 {dimension_numbers = #tpu.dot_dimension_numbers<[2], [1], [1], [2], [0, 0, 0, 1, 1, 2], [0], [0]>} : vector<4x8x16xbf16>, vector<4x16x32xbf16>, vector<4x8x32xf32> -> vector<4x8x32xf32>
    "tpu.trace_stop"() : () -> ()
    %cst_15 = arith.constant dense<0.000000e+00> : vector<8x32xf32>
    %25 = vector.multi_reduction <add>, %24, %cst_15 [0] : vector<4x8x32xf32> to vector<8x32xf32>
    %c0_16 = arith.constant 0 : index
    %c0_17 = arith.constant 0 : index
    %c0_18 = arith.constant 0 : index
    %26 = vector.load %arg7[%c0_16, %c0_17, %c0_18] : memref<1x8x32xf32, #tpu.memory_space<vmem>>, vector<1x8x32xf32>
    %27 = vector.shape_cast %26 : vector<1x8x32xf32> to vector<8x32xf32>
    %28 = vector.shape_cast %25 : vector<8x32xf32> to vector<1x8x32xf32>
    tpu.vector_store %arg7[%c0_16, %c0_17, %c0_18], %28 {strides = array<i32>} : memref<1x8x32xf32, #tpu.memory_space<vmem>>, vector<1x8x32xf32>,
    return
  }
  func.func @transform_0(%arg0: i32, %arg1: i32) -> (i32, i32, i32) {
    %c0_i32 = arith.constant 0 : i32
    %c0_i32_0 = arith.constant 0 : i32
    %c0_i32_1 = arith.constant 0 : i32
    return %arg0, %c0_i32, %c0_i32_0 : i32, i32, i32
  }
  func.func @transform_1(%arg0: i32, %arg1: i32) -> (i32, i32) {
    %c0_i32 = arith.constant 0 : i32
    %c0_i32_0 = arith.constant 0 : i32
    %c0_i32_1 = arith.constant 0 : i32
    return %c0_i32, %c0_i32_0 : i32, i32
  }
  func.func @transform_2(%arg0: i32, %arg1: i32) -> (i32, i32) {
    %c0_i32 = arith.constant 0 : i32
    %c0_i32_0 = arith.constant 0 : i32
    %c0_i32_1 = arith.constant 0 : i32
    return %c0_i32, %c0_i32_0 : i32, i32
  }
  func.func @transform_3(%arg0: i32, %arg1: i32) -> (i32, i32) {
    %c0_i32 = arith.constant 0 : i32
    %c0_i32_0 = arith.constant 0 : i32
    %c0_i32_1 = arith.constant 0 : i32
    return %c0_i32, %c0_i32_0 : i32, i32
  }
  func.func @transform_4(%arg0: i32, %arg1: i32) -> (i32, i32, i32) {
    %c0_i32 = arith.constant 0 : i32
    %c0_i32_0 = arith.constant 0 : i32
    %c0_i32_1 = arith.constant 0 : i32
    %c0_i32_2 = arith.constant 0 : i32
    return %c0_i32, %c0_i32_0, %c0_i32_1 : i32, i32, i32
  }
  func.func @transform_5(%arg0: i32, %arg1: i32) -> (i32, i32, i32) {
    %c0_i32 = arith.constant 0 : i32
    %c0_i32_0 = arith.constant 0 : i32
    return %arg0, %arg1, %c0_i32 : i32, i32, i32
  }
}

</mosaic_0001>

<bundles_post_ra>
// kernel: tpu_custom_call.1
= control target key start
LH: loop header
LB: loop body
LE: loop exit
PB: predicated region body
PF: predicated region fallthrough
CT: control target
= control target key end

     0   :  { %10 = vsyncpa [#allocation6], 0  ;;  %s2229_s0 = inlined_call_operand.hbm [shape: f32[2,8,32], index: 0, kind: input, shape index: {}]   ;;  %s2230_s1 = inlined_call_operand.hbm [shape: f32[1,32], index: 1, kind: input, shape index: {}]   ;;  %s2231_s2 = inlined_call_operand.hbm [shape: f32[1,32], index: 2, kind: input, shape index: {}]   ;;  %s2232_s3 = inlined_call_operand.hbm [shape: bf16[32,192], index: 3, kind: input, shape index: {}]   ;;  %s2233_s4 = inlined_call_operand.hbm [shape: bf16[4,16,32], index: 4, kind: input, shape index: {}]   ;;  %s2234_s5 = inlined_call_operand.hbm [shape: f32[2,8,32], index: 5, kind: output, shape index: {}]  }
   0x1   :  { %12 = vsyncpa [#allocation6 + $0x1], 0 }
   0x2   :  { %13 = vsyncpa [#allocation9], 0 }
   0x3   :  { %14 = vsyncpa [#allocation12], 0 }
   0x4   :  { %15 = vsyncpa [#allocation7], 0 }
   0x5   :  { %17 = vsyncpa [#allocation7 + $0x1], 0  ;;  %s1841_s18 = smov 0   ;;  %s1843_s19 = smov 0  }
   0x6   :  { %s1845_s20 = smov 0   ;;  %s1847_s21 = smov 0  }
   0x7   :  { %s1849_s22 = smov 0   ;;  %s1851_s23 = smov 0  }
   0x8 LB: > { %s1266_s24 = sadd.s32 4294967295, %s1789_s23   ;;  %p1268_p0 = scmp.ge.s32.totalorder %s1789_s23, 1  ;;  %s1789_s23 = sphi %s1851_s23, %s23_s23   ;;  %s1785_s22 = sphi %s1849_s22, %s2258_s22   ;;  %s1781_s21 = sphi %s1847_s21, %s2257_s21   ;;  %s1777_s20 = sphi %s1845_s20, %s2256_s20   ;;  %s1773_s19 = sphi %s1843_s19, %s2255_s19   ;;  %s1769_s18 = sphi %s1841_s18, %s2254_s18  }
   0x9   : > { %p1875_p1 = scmp.eq.s32.totalorder %s1266_s24, 0  ;;  %p178_p2 = scmp.lt.s32.totalorder %s1789_s23, 3 }
   0xa   : > { %s1791_s27 = smov [#allocation8]   ;;  %s1792_s29 = smov [#allocation11]  }
   0xb   : > { %s2239_s25 = scalar_select %p1875_p1, 1, 0 }
   0xc   : > { %p1880_p3 = pnand %p1268_p0, %p178_p2  ;;  %s191_s28 = sshll.u32 %s1791_s27, 4  ;;  %s192_s28 = int_to_ptr.vmem [resolvable:$true] %s191_s28 }
   0xd   : > { %s212_s30 = sshll.u32 %s1792_s29, 4  ;;  %s1793_s7 = smov [#allocation10]   ;;  %s1893_s30 = int_to_ptr.vmem [resolvable:$true] %s212_s30 }
   0xe   : > { %s2240_s26 = scalar_select %p1880_p3, 1, 0 }
   0xf   : > { %p1432_p5 = pneg %p1880_p3  ;;  %s1895_s8 = sshll.u32 %s1793_s7, 4  ;;  %s203_s8 = int_to_ptr.vmem [resolvable:$true] %s1895_s8 }
  0x10   : > { %s1557_s11 = scalar_lea.hbm %s2230_s1, 16 }
  0x11   : > { %p1889_p6 = pnand %p1432_p5, %p1875_p1  ;;  %p1558_p7 = scmp.ne.s32.totalorder %s2230_s1, %s1557_s11 }
  0x12   : > { %p1564_p11 = scmp.lt.u32.totalorder %s1557_s11, %s2230_s1 }
  0x13   : > { %p1905_p8 = pneg %p1889_p6 }
  0x15   : > { %p1560_p9 = pnand %p1905_p8, %p1558_p7 }
  0x17   : > { %p1561_p10 = pneg %p1560_p9 }
  0x19   : > { %p1566_p12 = pnand %p1564_p11, %p1561_p10 }
  0x1b   : > { %1569 = shalt.err (!%p1566_p12)
}
  0x1c   : > { %s1570_s17 = scalar_lea.vmem %s192_s28, 16  ;;  %s1577_s27 = scalar_lea.vmem %s192_s28, 32 }
  0x1d   : > { %p1571_p13 = scmp.ne.s32.totalorder %s192_s28, %s1570_s17  ;;  %p1578_p5 = scmp.lt.s32.totalorder %s192_s28, %s192_s28 }
  0x1e   : > { %p1579_p4 = scmp.lt.s32.totalorder %s1577_s27, %s1570_s17 }
  0x1f   : > { %p1573_p0 = pnand %p1571_p13, %p1905_p8 }
  0x20   : > { %p1580_p3 = por %p1579_p4, %p1578_p5 }
  0x21   : > { %p1574_p2 = pneg %p1573_p0 }
  0x23   : > { %p1581_p1 = pnand %p1580_p3, %p1574_p2 }
  0x25   : > { %1584 = shalt.err (!%p1581_p1)
}
  0x26   : > { %1435 = dma.hbm_to_vmem [thread:$0]  (!%p1889_p6), %s2230_s1, 16, %s192_s28, [#allocation9]  }
  0x27   : > { %s1585_s11 = scalar_lea.hbm %s2232_s3, 512 }
  0x28   : > { %p1586_p7 = scmp.ne.s32.totalorder %s2232_s3, %s1585_s11  ;;  %p1592_p1 = scmp.lt.u32.totalorder %s1585_s11, %s2232_s3 }
  0x2a   : > { %p1588_p9 = pnand %p1586_p7, %p1905_p8 }
  0x2c   : > { %p1589_p4 = pneg %p1588_p9 }
  0x2e   : > { %p1594_p3 = pnand %p1592_p1, %p1589_p4 }
  0x30   : > { %1597 = shalt.err (!%p1594_p3)
}
  0x31   : > { %s1598_s28 = scalar_lea.vmem %s1893_s30, 512  ;;  %p1606_p13 = scmp.lt.s32.totalorder %s1893_s30, %s1893_s30 }
  0x32   : > { %p1599_p10 = scmp.ne.s32.totalorder %s1893_s30, %s1598_s28  ;;  %p1607_p0 = scmp.lt.s32.totalorder %s1598_s28, %s1598_s28 }
  0x34   : > { %p1601_p11 = pnand %p1599_p10, %p1905_p8  ;;  %p1608_p2 = por %p1607_p0, %p1606_p13 }
  0x36   : > { %p1602_p12 = pneg %p1601_p11 }
  0x38   : > { %p1609_p5 = pnand %p1608_p2, %p1602_p12 }
  0x3a   : > { %1612 = shalt.err (!%p1609_p5)
}
  0x3b   : > { %s1794_s17 = smov 128   ;;  %s1795_s27 = smov 8  }
  0x3c   : > { %1441 = dma.hbm_to_vmem [thread:$0]  (!%p1889_p6), %s2232_s3, 512, %s1893_s30, [#allocation12], %s1794_s17, %s1794_s17, %s1795_s27  }
  0x3d   : > { %s1613_s11 = scalar_lea.hbm %s2231_s2, 16 }
  0x3e   : > { %p1614_p7 = scmp.ne.s32.totalorder %s2231_s2, %s1613_s11  ;;  %p1620_p1 = scmp.lt.u32.totalorder %s1613_s11, %s2231_s2 }
  0x40   : > { %p1616_p9 = pnand %p1614_p7, %p1905_p8 }
  0x42   : > { %p1617_p4 = pneg %p1616_p9 }
  0x44   : > { %p1622_p3 = pnand %p1620_p1, %p1617_p4 }
  0x46   : > { %1625 = shalt.err (!%p1622_p3)
}
  0x47   : > { %s1626_s28 = scalar_lea.vmem %s203_s8, 16  ;;  %s1633_s30 = scalar_lea.vmem %s203_s8, 32 }
  0x48   : > { %p1627_p10 = scmp.ne.s32.totalorder %s203_s8, %s1626_s28  ;;  %p1634_p13 = scmp.lt.s32.totalorder %s203_s8, %s203_s8 }
  0x49   : > { %p1635_p0 = scmp.lt.s32.totalorder %s1633_s30, %s1626_s28 }
  0x4a   : > { %p1629_p11 = pnand %p1627_p10, %p1905_p8 }
  0x4b   : > { %p1636_p2 = por %p1635_p0, %p1634_p13 }
  0x4c   : > { %p1630_p12 = pneg %p1629_p11 }
  0x4e   : > { %p1637_p5 = pnand %p1636_p2, %p1630_p12 }
  0x50   : > { %1640 = shalt.err (!%p1637_p5)
}
  0x51   : > { %1438 = dma.hbm_to_vmem [thread:$0]  (!%p1889_p6), %s2231_s2, 16, %s203_s8, [#allocation9]  }
  0x52   : > { %s1796_s29 = smov [#allocation13]   ;;  %s1641_s11 = scalar_lea.hbm %s2233_s4, 512 }
  0x53   : > { %s225_s7 = sshll.u32 %s1796_s29, 4  ;;  %p1642_p7 = scmp.ne.s32.totalorder %s2233_s4, %s1641_s11  ;;  %s226_s7 = int_to_ptr.vmem [resolvable:$true] %s225_s7 }
  0x54   : > { %p1648_p1 = scmp.lt.u32.totalorder %s1641_s11, %s2233_s4 }
  0x55   : > { %p1644_p9 = pnand %p1642_p7, %p1905_p8 }
  0x57   : > { %p1645_p4 = pneg %p1644_p9 }
  0x59   : > { %p1650_p3 = pnand %p1648_p1, %p1645_p4 }
  0x5b   : > { %1653 = shalt.err (!%p1650_p3)
}
  0x5c   : > { %s1654_s8 = scalar_lea.vmem %s226_s7, 512  ;;  %p1662_p13 = scmp.lt.s32.totalorder %s226_s7, %s226_s7 }
  0x5d   : > { %p1655_p10 = scmp.ne.s32.totalorder %s226_s7, %s1654_s8  ;;  %p1663_p0 = scmp.lt.s32.totalorder %s1654_s8, %s1654_s8 }
  0x5f   : > { %p1657_p11 = pnand %p1655_p10, %p1905_p8  ;;  %p1664_p2 = por %p1663_p0, %p1662_p13 }
  0x61   : > { %p1658_p12 = pneg %p1657_p11 }
  0x63   : > { %p1665_p5 = pnand %p1664_p2, %p1658_p12 }
  0x65   : > { %1668 = shalt.err (!%p1665_p5)
}
  0x66   : > { %s1797_s28 = smov 64   ;;  %s1798_s14 = smov 4  }
  0x67   : > { %1444 = dma.hbm_to_vmem [thread:$0]  (!%p1889_p6), %s2233_s4, 512, %s226_s7, [#allocation12], %s1797_s28, %s1797_s28, %s1798_s14  }
  0x68   : > { %s1267_s27 = sadd.s32 4294967294, %s1789_s23   ;;  %s35_s29 = sadd.s32 1, %s1785_s22 }
  0x69   : > { %p37_p8 = scmp.ge.s32.totalorder %s35_s29, 2  ;;  %s42_s9 = sadd.s32 1, %s1777_s20 }
  0x6a   : > { %p49_p7 = scmp.ne.s32.totalorder %s1777_s20, %s1773_s19  ;;  %p50_p9 = scmp.eq.s32.totalorder %s1789_s23, 0 }
  0x6b   : > { %s2260_s29 = smov (%p37_p8, %s35_s29), 0  ;;  %p55_p1 = scmp.ne.s32.totalorder %s1773_s19, %s1769_s18 }
  0x6c   : > { %p1989_p4 = por %p50_p9, %p49_p7  ;;  %s39_s6 = ssub.s32 %s1785_s22, %s2260_s29 }
  0x6d   : > { %p165_p6 = scmp.eq.s32.totalorder %s1266_s24, 1  ;;  %p40_p3 = scmp.eq.s32.totalorder %s39_s6, 0 }
  0x6e   : > { %p2244_p10 = scmp.ne.s32.totalorder %s2239_s25, 0  ;;  %p171_p13 = scmp.eq.s32.totalorder %s1267_s27, 1 }
  0x6f   : > { %p2005_p12 = por %p165_p6, %p49_p7  ;;  %p1457_p2 = scmp.lt.s32.totalorder %s1789_s23, 2 }
  0x70   : > { %p2001_p11 = por %p2244_p10, %p55_p1  ;;  %p2012_p0 = por %p171_p13, %p55_p1 }
  0x71   : > { %s2246_s11 = scalar_select %p2005_p12, 1, 0 }
  0x72   : > { %s2010_s12 = scalar_select %p40_p3, %s1777_s20, %s42_s9  }
  0x73   : > { %s2247_s13 = scalar_select %p2012_p0, 1, 0 }
  0x74   : > { %s239_s15 = sand.u32 1, %s1777_s20   ;;  %s1275_s24 = sshll.u32 %s1785_s22, 7 }
  0x75   : > { %s1274_s16 = sshll.u32 %s239_s15, 3  ;;  %s2022_s14 = scalar_lea.hbm %s2229_s0, %s1275_s24 }
  0x76   : > { %s243_s30 = scalar_lea.vmem [#allocation5], %s1274_s16  ;;  %p2026_p5 = pnand %p1457_p2, %p1989_p4 }
  0x77   : > { %s250_s17 = sshll.u32 %s243_s30, 4  ;;  %s240_s9 = scalar_lea.sflag [#allocation6], %s239_s15  ;;  %s2030_s17 = int_to_ptr.vmem [resolvable:$true] %s250_s17 }
  0x78   : > { %s1669_s6 = scalar_lea.hbm %s2022_s14, 128  ;;  %p1671_p7 = pneg %p2026_p5 }
  0x79   : > { %p1670_p8 = scmp.ne.s32.totalorder %s2022_s14, %s1669_s6  ;;  %s1674_s10 = scalar_lea.hbm %s2229_s0, 256 }
  0x7a   : > { %p1675_p4 = scmp.lt.u32.totalorder %s2022_s14, %s2229_s0  ;;  %p1676_p6 = scmp.lt.u32.totalorder %s1674_s10, %s1669_s6 }
  0x7b   : > { %p1672_p9 = pnand %p1671_p7, %p1670_p8  ;;  %p1678_p10 = scmp.lt.u32.totalorder %s1669_s6, %s2022_s14 }
  0x7c   : > { %p1677_p3 = por %p1676_p6, %p1675_p4 }
  0x7d   : > { %p1673_p1 = pneg %p1672_p9 }
  0x7e   : > { %p1679_p13 = por %p1678_p10, %p1677_p3 }
  0x80   : > { %p1680_p2 = pnand %p1679_p13, %p1673_p1 }
  0x82   : > { %1683 = shalt.err (!%p1680_p2)
}
  0x83   : > { %s1684_s15 = scalar_lea.vmem %s2030_s17, 128  ;;  %s1799_s30 = smov [#allocation5]  }
  0x84   : > { %p1685_p8 = scmp.ne.s32.totalorder %s2030_s17, %s1684_s15  ;;  %s1689_s24 = sshll.u32 %s1799_s30, 4  ;;  %s1690_s24 = int_to_ptr.vmem [resolvable:$false] %s1689_s24 }
  0x85   : > { %s1691_s16 = scalar_lea.vmem %s1690_s24, 256  ;;  %p1692_p12 = scmp.lt.s32.totalorder %s2030_s17, %s1690_s24 }
  0x86   : > { %p1687_p9 = pnand %p1685_p8, %p1671_p7  ;;  %p1693_p4 = scmp.lt.s32.totalorder %s1691_s16, %s1684_s15 }
  0x88   : > { %p1688_p0 = pneg %p1687_p9  ;;  %p1694_p6 = por %p1693_p4, %p1692_p12 }
  0x8a   : > { %p1695_p3 = pnand %p1694_p6, %p1688_p0 }
  0x8c   : > { %1698 = shalt.err (!%p1695_p3)
}
  0x8d   : > { %1448 = dma.hbm_to_vmem [thread:$0]  (!%p2026_p5), %s2022_s14, 128, %s2030_s17, %s240_s9  }
  0x8e   : > { %p2249_p1 = scmp.ne.s32.totalorder %s2240_s26, 0 }
  0x8f   : > { %s2060_s6 = sand.u32 (!%p2249_p1), 1, %s1773_s19  }
  0x90   : > { %259 = sbr.rel (%p2249_p1) target bundleno = 1804 (0x70c), region = 40  ;;  %s1277_s10 = sshll.u32 (!%p2249_p1), %s2060_s6, 3 }
  0x91   : > { %s262_s8 = scalar_lea.sflag (!%p2249_p1), [#allocation6], %s2060_s6  ;;  %s265_s28 = scalar_lea.vmem (!%p2249_p1), [#allocation5], %s1277_s10 }
  0x97   : > { %1752 = dma.done.wait (%p2001_p11), %s262_s8, 128  }
  0x98   : > { %1754 = vsyncadd (%p2001_p11), %s262_s8, 4294967168  ;;  %p2250_p12 = scmp.ne.s32.totalorder %s2239_s25, 0 }
  0x9a   : > { %1756 = dma.done.wait (%p2250_p12), [#allocation9], 32  }
  0x9b   : > { %1758 = vsyncadd (%p2250_p12), [#allocation9], 4294967264 }
  0x9c   : > { %1760 = dma.done.wait (%p2250_p12), [#allocation12], 1024  }
  0x9d   : > { %1762 = vsyncadd (%p2250_p12), [#allocation12], 4294966272  ;;  %vm316_vm0 = vcmask 261120   ;;  %v315_v0 = vld [vmem:[%s265_s28] sm:$0xff]  ;;  %v1531_v8 = vld [vmem:[#allocation11] ss:$8 sps:$4 sm:$0xff]  }
  0x9e   : > { %v317_v1 = vsel %vm316_vm0, %v315_v0, 0.0  ;;  %v1529_v7 = vld [vmem:[#allocation11 + $0x4] ss:$8 sps:$4 sm:$0xff]   ;;  %v1532_v9 = vld [vmem:[#allocation11 + $0x14] ss:$8 sps:$4 sm:$0xff]   ;;  %v1800_v10 = vmov 0  }
  0x9f   : > { %318 = vadd.xlane.f32.xlu0 %v317_v1  ;;  %373 = vmatprep.subr.bf16.mxu0 %v1529_v7  ;;  %v1534_v11 = vld [vmem:[#allocation11 + $0x10] ss:$8 sps:$4 sm:$0xff]   ;;  %v1283_v16 = vld [vmem:[#allocation8] ss:$0 sm:$0xff]  ;;  %v1284_v18 = vld [vmem:[#allocation10] ss:$0 sm:$0xff] }
  0xa0   : > { %405 = vmatprep.mubr.bf16.mxu0 %v1800_v10  ;;  %374 = vmatpush1.bf16.msra.mxu0 %v1531_v8  ;;  %v1801_v22 = vmov 0.0   ;;  %vm416_vm1 = vcmask 125952   ;;  %s1802_s25 = smov 32   ;;  %s1803_s26 = smov 64   ;;  %vm1804_vm2 = vmmov 0   ;;  %vm496_vm3 = vcmask 130048  }
  0xa1   : > { %375 = vmatprep.subr.bf16.mxu0 %v1532_v9  ;;  %1340 = vmatprep.subr.bf16.mxu1 %v1801_v22  ;;  %s1805_s7 = smov 48   ;;  %s1806_s14 = smov 16   ;;  %vm733_vm4 = vcmask 1043456   ;;  %vm681_vm5 = vcmask 64512  }
  0xa2   : > { %1342 = vmatprep.mubr.msk.bf16.mxu1 %vm1804_vm2, %v1801_v22  ;;  %s1807_s17 = smov 112   ;;  %s1808_s27 = smov 96  }
  0xa3   : > { %s1809_s9 = smov 80   ;;  %s1310_s15 = sshll.u32 %s1781_s21, 7 }
  0xa4   : > { %376 = vmatpush1.bf16.msra.mxu0 %v1534_v11  ;;  %s307_s30 = scalar_lea.vmem [#allocation14], %s1277_s10  ;;  %s2179_s28 = scalar_lea.hbm %s2234_s5, %s1310_s15 }
  0xa5   : > { %1346 = vmatprep.subr.bf16.mxu0 %v1801_v22  ;;  %s1147_s24 = sshll.u32 %s307_s30, 4  ;;  %s1133_s21 = scalar_lea.sflag [#allocation7], %s2060_s6  ;;  %s2181_s24 = int_to_ptr.vmem [resolvable:$true] %s1147_s24 }
  0xa6   : > { %s1699_s10 = scalar_lea.vmem %s2181_s24, 128  ;;  %p2251_p0 = scmp.ne.s32.totalorder %s2246_s11, 0 }
  0xa7   : > { %p1700_p11 = scmp.ne.s32.totalorder %s2181_s24, %s1699_s10 }
  0xa9   : > { %p1701_p5 = pnand %p1700_p11, %p2251_p0 }
  0xab   : > { %p1702_p7 = pneg %p1701_p5 }
 0x12c   : > { %v319_v2 = vpop.xlane.xlu0 %318 }
 0x12d   : > { %v321_v3 = vmul.f32 0.03125, %v319_v2 }
 0x12f   : > { %v322_v4 = vsub.f32 %v315_v0, %v321_v3 }
 0x131   : > { %v323_v5 = vmul.f32 %v322_v4, %v322_v4 }
 0x133   : > { %v324_v6 = vsel %vm316_vm0, %v323_v5, 0.0 }
 0x134   : > { %325 = vadd.xlane.f32.xlu0 %v324_v6 }
 0x1c1   : > { %v326_v12 = vpop.xlane.xlu0 %325 }
 0x1c2   : > { %v327_v13 = vmul.f32 0.03125, %v326_v12 }
 0x1c4   : > { %v328_v14 = vadd.f32 1e-05, %v327_v13 }
 0x1c6   : > { %1539 = vrsqrt.f32 %v328_v14 }
 0x1d0   : > { %v1540_v15 = vpop.eup %1539 }
 0x1d1   : > { %v330_v17 = vmul.f32 %v1540_v15, %v322_v4 }
 0x1d3   : > { %v337_v19 = vmul.f32 %v1283_v16, %v330_v17 }
 0x1d5   : > { %v344_v20 = vadd.f32 %v1284_v18, %v337_v19 }
 0x1d7   : > { %v345_v21 = vpack.c.bf16 %v344_v20, %v344_v20 }
 0x1d9   : > { %1289 = vmatmul.mubr.msk.bf16.vlgmr.msra.gmra.mrb[0].mxu0 %vm316_vm0, %v345_v21 }
 0x1da   : > { %1348 = vmatprep.mubr.msk.bf16.mxu0 %vm1804_vm2, %v1801_v22 }
 0x2ac   : > { %v407_v23 = vpop.f32.mrb[0].mxu0 }
 0x2ad   : > { %v414_v24 = vmul.f32 0.25, %v407_v23  ;;  %v1313_v25 = vpack.c.bf16 %v407_v23, %v407_v23  ;;  %v409_v26 = vpop.f32.mrb[1].mxu0 }
 0x2ae   : > { %v2083_v27 = vpack.c.bf16 %v409_v26, %v409_v26  ;;  %v411_v28 = vpop.f32.mrb[2].mxu0 }
 0x2af   : > { %v415_v29 = vpack.c.bf16 %v414_v24, %v414_v24  ;;  %454 = vrot.lane.b32.xlu0 %v1313_v25, %s1802_s25  ;;  %422 = vrot.lane.b32.xlu1 %v1313_v25, %s1803_s26  ;;  %v412_v30 = vpop.f32.mrb[3].mxu0  ;;  %s1810_s25 = smov [#allocation14]  }
 0x2b0   : > { %427 = vst.msk [vmem:[#allocation4] sm:$0xf] %vm416_vm1, %v2083_v27  ;;  %s1703_s26 = sshll.u32 %s1810_s25, 4  ;;  %s1704_s26 = int_to_ptr.vmem [resolvable:$false] %s1703_s26 }
 0x2b1   : > { %417 = vst.msk [vmem:[#allocation2] sm:$0xf] %vm416_vm1, %v415_v29  ;;  %p1706_p10 = scmp.lt.s32.totalorder %s2181_s24, %s1704_s26 }
 0x2b3   : > { %436 = vrot.lane.b32.xlu1 %v1313_v25, %s1805_s7  ;;  %s1705_s7 = scalar_lea.vmem %s1704_s26, 256 }
 0x2b4   : > { %p1707_p13 = scmp.lt.s32.totalorder %s1705_s7, %s1699_s10 }
 0x2b6   : > { %p1708_p2 = por %p1707_p13, %p1706_p10 }
 0x2b7   : > { %469 = vrot.lane.b32.xlu1 %v1313_v25, %s1806_s14  ;;  %v492_v48 = vld [vmem:[#allocation4] sm:$0xf] }
 0x2b8   : > { %v484_v42 = vld [vmem:[#allocation2] sm:$0xf]  ;;  %v735_v50 = vsel %vm733_vm4, %v492_v48, 0  ;;  %p1709_p8 = pnand %p1708_p2, %p1702_p7 }
 0x2bb   : > { %431 = vrot.lane.b32.xlu1 %v415_v29, %s1807_s17 }
 0x2bf   : > { %449 = vrot.lane.b32.xlu1 %v415_v29, %s1808_s27 }
 0x2c3   : > { %464 = vrot.lane.b32.xlu1 %v415_v29, %s1809_s9 }
 0x321   : > { %v455_v31 = vpop.permute.xlu0 %454  ;;  %v423_v32 = vpop.permute.xlu1 %422 }
 0x322   : > { %458 = vst.msk [vmem:[#allocation3 + $0x8] sm:$0xf] %vm416_vm1, %v455_v31  ;;  %425 = vst.msk [vmem:[#allocation3] sm:$0xf] %vm416_vm1, %v423_v32 }
 0x325   : > { %v437_v33 = vpop.permute.xlu1 %436 }
 0x326   : > { %440 = vst.msk [vmem:[#allocation3 + $0x4] sm:$0xf] %vm416_vm1, %v437_v33 }
 0x329   : > { %v470_v34 = vpop.permute.xlu1 %469  ;;  %v488_v35 = vld [vmem:[#allocation3] sm:$0xf]  ;;  %v490_v40 = vld [vmem:[#allocation3 + $0x8] sm:$0xf] }
 0x32a   : > { %473 = vst.msk [vmem:[#allocation3 + $0xc] sm:$0xf] %vm416_vm1, %v470_v34  ;;  %v501_v36 = vsel %vm496_vm3, %v488_v35, 0  ;;  %v593_v43 = vsel %vm496_vm3, %v490_v40, 0 }
 0x32b   : > { %1341 = vmatpush3.bf16.xpose.msra.mxu1 %v501_v36 }
 0x32c   : > { %1352 = vmatprep.subr.bf16.mxu1 %v1801_v22 }
 0x32d   : > { %v432_v37 = vpop.permute.xlu1 %431  ;;  %v489_v38 = vld [vmem:[#allocation3 + $0x4] sm:$0xf] }
 0x32e   : > { %435 = vst.msk [vmem:[#allocation2 + $0x4] sm:$0xf] %vm416_vm1, %v432_v37  ;;  %v547_v39 = vsel %vm496_vm3, %v489_v38, 0 }
 0x32f   : > { %1347 = vmatpush3.bf16.xpose.msra.mxu0 %v547_v39 }
 0x330   : > { %1358 = vmatprep.subr.bf16.mxu0 %v1801_v22 }
 0x331   : > { %v450_v41 = vpop.permute.xlu1 %449  ;;  %v491_v44 = vld [vmem:[#allocation3 + $0xc] sm:$0xf] }
 0x332   : > { %453 = vst.msk [vmem:[#allocation2 + $0x8] sm:$0xf] %vm416_vm1, %v450_v41  ;;  %1343 = vmatmul.mubr.msk.bf16.vlgmr.msra.gmra.mrb[0].mxu1 %vm496_vm3, %v484_v42  ;;  %v639_v47 = vsel %vm496_vm3, %v491_v44, 0 }
 0x333   : > { %1353 = vmatpush3.bf16.xpose.msra.mxu1 %v593_v43  ;;  %1354 = vmatprep.mubr.msk.bf16.mxu1 %vm1804_vm2, %v1801_v22 }
 0x334   : > { %1364 = vmatprep.subr.bf16.mxu1 %v1801_v22 }
 0x335   : > { %v465_v45 = vpop.permute.xlu1 %464  ;;  %v485_v46 = vld [vmem:[#allocation2 + $0x4] sm:$0xf] }
 0x336   : > { %468 = vst.msk [vmem:[#allocation2 + $0xc] sm:$0xf] %vm416_vm1, %v465_v45  ;;  %1349 = vmatmul.mubr.msk.bf16.vlgmr.msra.gmra.mrb[4].mxu0 %vm496_vm3, %v485_v46 }
 0x337   : > { %1359 = vmatpush3.bf16.xpose.msra.mxu0 %v639_v47  ;;  %1360 = vmatprep.mubr.msk.bf16.mxu0 %vm1804_vm2, %v1801_v22 }
 0x338   : > { %1370 = vmatprep.subr.bf16.mxu0 %v1801_v22 }
 0x339   : > { %v486_v49 = vld [vmem:[#allocation2 + $0x8] sm:$0xf] }
 0x33a   : > { %1355 = vmatmul.mubr.msk.bf16.vlgmr.msra.gmra.mrb[4].mxu1 %vm496_vm3, %v486_v49 }
 0x33b   : > { %1365 = vmatpush3.bf16.msra.mxu1 %v735_v50  ;;  %1366 = vmatprep.mubr.msk.bf16.mxu1 %vm1804_vm2, %v1801_v22 }
 0x33c   : > { %1376 = vmatprep.subr.bf16.mxu1 %v1801_v22 }
 0x33d   : > { %v487_v51 = vld [vmem:[#allocation2 + $0xc] sm:$0xf] }
 0x33e   : > { %1361 = vmatmul.mubr.msk.bf16.vlgmr.msra.gmra.mrb[8].mxu0 %vm496_vm3, %v487_v51 }
 0x33f   : > { %1372 = vmatprep.mubr.msk.bf16.mxu0 %vm1804_vm2, %v1801_v22 }
 0x405   : > { %v537_v52 = vpop.f32.mrb[0].mxu1 }
 0x406   : > { %v1344_v53 = vpop.f32.mrb[1].mxu1  ;;  %v682_v54 = vsel %vm681_vm5, %v537_v52, -inf }
 0x407   : > { %683 = vmax.xlane.f32.xlu1 %v682_v54  ;;  %v540_v55 = vpop.f32.mrb[2].mxu1  ;;  %v1535_v54 = vld [vmem:[#allocation13] sm:$0xff]  }
 0x408   : > { %v1345_v56 = vpop.f32.mrb[3].mxu1  ;;  %v1536_v55 = vld [vmem:[#allocation13 + $0x8] sm:$0xff]  }
 0x409   : > { %v583_v57 = vpop.f32.mrb[4].mxu0 }
 0x40a   : > { %v1350_v58 = vpop.f32.mrb[5].mxu0  ;;  %v685_v59 = vsel %vm681_vm5, %v583_v57, -inf }
 0x40b   : > { %686 = vmax.xlane.f32.xlu0 %v685_v59  ;;  %v586_v60 = vpop.f32.mrb[6].mxu0 }
 0x40c   : > { %v1351_v61 = vpop.f32.mrb[7].mxu0 }
 0x40d   : > { %v629_v62 = vpop.f32.mrb[4].mxu1 }
 0x40e   : > { %v1356_v63 = vpop.f32.mrb[5].mxu1  ;;  %v688_v0 = vsel %vm681_vm5, %v629_v62, -inf }
 0x40f   : > { %689 = vmax.xlane.f32.xlu1 %v688_v0  ;;  %v632_v1 = vpop.f32.mrb[6].mxu1  ;;  %v1537_v63 = vld [vmem:[#allocation13 + $0x18] sm:$0xff]  }
 0x410   : > { %v1357_v2 = vpop.f32.mrb[7].mxu1 }
 0x411   : > { %v675_v3 = vpop.f32.mrb[8].mxu0 }
 0x412   : > { %v1362_v4 = vpop.f32.mrb[9].mxu0  ;;  %v691_v5 = vsel %vm681_vm5, %v675_v3, -inf }
 0x413   : > { %692 = vmax.xlane.f32.xlu0 %v691_v5  ;;  %v678_v6 = vpop.f32.mrb[10].mxu0 }
 0x414   : > { %v1363_v7 = vpop.f32.mrb[11].mxu0 }
 0x420   : > { %444 = vrot.lane.b32.xlu1 %v2083_v27, %s1807_s17 }
 0x494   : > { %v684_v8 = vpop.xlane.xlu1 %683 }
 0x495   : > { %v694_v9 = vsub.f32 %v537_v52, %v684_v8 }
 0x497   : > { %v698_v10 = vmul.f32 1.442695, %v694_v9 }
 0x498   : > { %v687_v11 = vpop.xlane.xlu0 %686 }
 0x499   : > { %1541 = vpow2.f32 %v698_v10  ;;  %v695_v12 = vsub.f32 %v583_v57, %v687_v11  ;;  %v1538_v57 = vld [vmem:[#allocation13 + $0x10] sm:$0xff]  }
 0x49b   : > { %v700_v13 = vmul.f32 1.442695, %v695_v12 }
 0x49c   : > { %v690_v14 = vpop.xlane.xlu1 %689 }
 0x49d   : > { %1543 = vpow2.f32 %v700_v13  ;;  %v696_v15 = vsub.f32 %v629_v62, %v690_v14 }
 0x49f   : > { %v702_v16 = vmul.f32 1.442695, %v696_v15 }
 0x4a0   : > { %v445_v17 = vpop.permute.xlu1 %444  ;;  %v693_v18 = vpop.xlane.xlu0 %692 }
 0x4a1   : > { %1545 = vpow2.f32 %v702_v16  ;;  %448 = vst.msk [vmem:[#allocation4 + $0x4] sm:$0xf] %vm416_vm1, %v445_v17  ;;  %v697_v19 = vsub.f32 %v675_v3, %v693_v18 }
 0x4a3   : > { %v1542_v20 = vpop.eup %1541  ;;  %v704_v21 = vmul.f32 1.442695, %v697_v19 }
 0x4a4   : > { %v706_v23 = vsel %vm681_vm5, %v1542_v20, 0.0 }
 0x4a5   : > { %1547 = vpow2.f32 %v704_v21  ;;  %707 = vadd.xlane.f32.xlu1 %v706_v23 }
 0x4a7   : > { %v1544_v24 = vpop.eup %1543 }
 0x4a8   : > { %v709_v25 = vsel %vm681_vm5, %v1544_v24, 0.0  ;;  %v493_v26 = vld [vmem:[#allocation4 + $0x4] sm:$0xf] }
 0x4a9   : > { %710 = vadd.xlane.f32.xlu0 %v709_v25  ;;  %v781_v28 = vsel %vm733_vm4, %v493_v26, 0 }
 0x4aa   : > { %1371 = vmatpush3.bf16.msra.mxu0 %v781_v28 }
 0x4ab   : > { %v1546_v29 = vpop.eup %1545  ;;  %1382 = vmatprep.subr.bf16.mxu0 %v1801_v22 }
 0x4ac   : > { %v712_v30 = vsel %vm681_vm5, %v1546_v29, 0.0 }
 0x4ad   : > { %713 = vadd.xlane.f32.xlu1 %v712_v30 }
 0x4af   : > { %v1548_v31 = vpop.eup %1547 }
 0x4b0   : > { %v715_v32 = vsel %vm681_vm5, %v1548_v31, 0.0 }
 0x4b1   : > { %716 = vadd.xlane.f32.xlu0 %v715_v32 }
 0x4be   : > { %474 = vrot.lane.b32.xlu1 %v2083_v27, %s1809_s9 }
 0x4c7   : > { %459 = vrot.lane.b32.xlu0 %v2083_v27, %s1808_s27 }
 0x532   : > { %v708_v33 = vpop.xlane.xlu1 %707 }
 0x533   : > { %1549 = vrcp.f32 %v708_v33 }
 0x536   : > { %v711_v34 = vpop.xlane.xlu0 %710 }
 0x537   : > { %1551 = vrcp.f32 %v711_v34 }
 0x53a   : > { %v714_v35 = vpop.xlane.xlu1 %713 }
 0x53b   : > { %1553 = vrcp.f32 %v714_v35 }
 0x53d   : > { %v1550_v36 = vpop.eup %1549 }
 0x53e   : > { %v722_v37 = vmul.f32 %v1550_v36, %v1542_v20  ;;  %v475_v38 = vpop.permute.xlu1 %474  ;;  %v717_v39 = vpop.xlane.xlu0 %716 }
 0x53f   : > { %478 = vst.msk [vmem:[#allocation4 + $0xc] sm:$0xf] %vm416_vm1, %v475_v38  ;;  %1555 = vrcp.f32 %v717_v39 }
 0x540   : > { %v726_v40 = vpack.c.bf16 %v722_v37, %v722_v37 }
 0x541   : > { %v1552_v41 = vpop.eup %1551 }
 0x542   : > { %v723_v42 = vmul.f32 %v1552_v41, %v1544_v24  ;;  %1367 = vmatmul.mubr.msk.bf16.vlgmr.msra.gmra.mrb[8].mxu1 %vm681_vm5, %v726_v40  ;;  %v460_v43 = vpop.permute.xlu0 %459 }
 0x543   : > { %463 = vst.msk [vmem:[#allocation4 + $0x8] sm:$0xf] %vm416_vm1, %v460_v43  ;;  %1378 = vmatprep.mubr.msk.bf16.mxu1 %vm1804_vm2, %v1801_v22 }
 0x544   : > { %v727_v27 = vpack.c.bf16 %v723_v42, %v723_v42 }
 0x545   : > { %v1554_v44 = vpop.eup %1553 }
 0x546   : > { %1373 = vmatmul.mubr.msk.bf16.vlgmr.msra.gmra.mrb[12].mxu0 %vm681_vm5, %v727_v27  ;;  %v495_v45 = vld [vmem:[#allocation4 + $0xc] sm:$0xf]  ;;  %v724_v48 = vmul.f32 %v1554_v44, %v1546_v29 }
 0x547   : > { %v873_v46 = vsel %vm733_vm4, %v495_v45, 0  ;;  %1384 = vmatprep.mubr.msk.bf16.mxu0 %vm1804_vm2, %v1801_v22 }
 0x548   : > { %1383 = vmatpush3.bf16.msra.mxu0 %v873_v46  ;;  %v728_v53 = vpack.c.bf16 %v724_v48, %v724_v48 }
 0x549   : > { %v1556_v47 = vpop.eup %1555  ;;  %1394 = vmatprep.subr.bf16.mxu0 %v1801_v22 }
 0x54a   : > { %v725_v49 = vmul.f32 %v1556_v47, %v1548_v31  ;;  %v494_v50 = vld [vmem:[#allocation4 + $0x8] sm:$0xf] }
 0x54b   : > { %v827_v51 = vsel %vm733_vm4, %v494_v50, 0 }
 0x54c   : > { %1377 = vmatpush3.bf16.msra.mxu1 %v827_v51  ;;  %v729_v52 = vpack.c.bf16 %v725_v49, %v725_v49 }
 0x54d   : > { %1388 = vmatprep.subr.bf16.mxu1 %v1801_v22 }
 0x54e   : > { %1385 = vmatmul.mubr.msk.bf16.vlgmr.msra.gmra.mrb[16].mxu0 %vm681_vm5, %v729_v52 }
 0x54f   : > { %1379 = vmatmul.mubr.msk.bf16.vlgmr.msra.gmra.mrb[12].mxu1 %vm681_vm5, %v728_v53  ;;  %1396 = vmatprep.mubr.msk.bf16.mxu0 %vm1804_vm2, %v1801_v22 }
 0x550   : > { %1390 = vmatprep.mubr.msk.bf16.mxu1 %vm1804_vm2, %v1801_v22  ;;  %1389 = vmatpush3.bf16.msra.mxu1 %v1535_v54 }
 0x551   : > { %1400 = vmatprep.subr.bf16.mxu1 %v1801_v22  ;;  %1395 = vmatpush3.bf16.msra.mxu0 %v1536_v55 }
 0x552   : > { %1406 = vmatprep.subr.bf16.mxu0 %v1801_v22 }
 0x615   : > { %v771_v56 = vpop.f32.mrb[8].mxu1 }
 0x616   : > { %v915_v58 = vpack.c.bf16 %v771_v56, %v771_v56  ;;  %v1368_v59 = vpop.f32.mrb[9].mxu1 }
 0x617   : > { %v774_v60 = vpop.f32.mrb[10].mxu1 }
 0x618   : > { %v1369_v61 = vpop.f32.mrb[11].mxu1  ;;  %1391 = vmatmul.mubr.msk.bf16.vlgmr.msra.gmra.mrb[16].mxu1 %vm496_vm3, %v915_v58 }
 0x619   : > { %v817_v62 = vpop.f32.mrb[12].mxu0  ;;  %1401 = vmatpush3.bf16.msra.mxu1 %v1538_v57  ;;  %1402 = vmatprep.mubr.msk.bf16.mxu1 %vm1804_vm2, %v1801_v22 }
 0x61a   : > { %v916_v0 = vpack.c.bf16 %v817_v62, %v817_v62  ;;  %v1374_v1 = vpop.f32.mrb[13].mxu0 }
 0x61b   : > { %v820_v2 = vpop.f32.mrb[14].mxu0 }
 0x61c   : > { %v1375_v3 = vpop.f32.mrb[15].mxu0  ;;  %1397 = vmatmul.mubr.msk.bf16.vlgmr.msra.gmra.mrb[20].mxu0 %vm496_vm3, %v916_v0 }
 0x61d   : > { %1407 = vmatpush3.bf16.msra.mxu0 %v1537_v63  ;;  %1408 = vmatprep.mubr.msk.bf16.mxu0 %vm1804_vm2, %v1801_v22 }
 0x621   : > { %v909_v4 = vpop.f32.mrb[16].mxu0 }
 0x622   : > { %v918_v5 = vpack.c.bf16 %v909_v4, %v909_v4  ;;  %v863_v6 = vpop.f32.mrb[12].mxu1  ;;  %v1386_v7 = vpop.f32.mrb[17].mxu0 }
 0x623   : > { %v917_v8 = vpack.c.bf16 %v863_v6, %v863_v6  ;;  %v1380_v9 = vpop.f32.mrb[13].mxu1  ;;  %v912_v10 = vpop.f32.mrb[18].mxu0 }
 0x624   : > { %v866_v11 = vpop.f32.mrb[14].mxu1  ;;  %v1387_v12 = vpop.f32.mrb[19].mxu0  ;;  %1409 = vmatmul.mubr.msk.bf16.vlgmr.msra.gmra.mrb[24].mxu0 %vm496_vm3, %v918_v5 }
 0x625   : > { %v1381_v13 = vpop.f32.mrb[15].mxu1  ;;  %1403 = vmatmul.mubr.msk.bf16.vlgmr.msra.gmra.mrb[20].mxu1 %vm496_vm3, %v917_v8 }
 0x6eb   : > { %v970_v14 = vpop.f32.mrb[16].mxu1 }
 0x6ec   : > { %v1392_v15 = vpop.f32.mrb[17].mxu1  ;;  %v1124_v18 = vsel %vm316_vm0, %v970_v14, 0.0 }
 0x6ed   : > { %v973_v16 = vpop.f32.mrb[18].mxu1 }
 0x6ee   : > { %v1393_v22 = vpop.f32.mrb[19].mxu1 }
 0x6ef   : > { %v1019_v17 = vpop.f32.mrb[20].mxu0 }
 0x6f0   : > { %v1125_v19 = vsel %vm316_vm0, %v1019_v17, 0.0  ;;  %v1398_v20 = vpop.f32.mrb[21].mxu0 }
 0x6f1   : > { %v1126_v21 = vadd.f32 %v1125_v19, %v1124_v18  ;;  %v1022_v23 = vpop.f32.mrb[22].mxu0 }
 0x6f2   : > { %v1399_v24 = vpop.f32.mrb[23].mxu0 }
 0x6f7   : > { %v1117_v25 = vpop.f32.mrb[24].mxu0 }
 0x6f8   : > { %v1068_v26 = vpop.f32.mrb[20].mxu1  ;;  %v1410_v28 = vpop.f32.mrb[25].mxu0  ;;  %v1129_v35 = vsel %vm316_vm0, %v1117_v25, 0.0 }
 0x6f9   : > { %v1127_v29 = vsel %vm316_vm0, %v1068_v26, 0.0  ;;  %v1404_v30 = vpop.f32.mrb[21].mxu1  ;;  %v1120_v31 = vpop.f32.mrb[26].mxu0 }
 0x6fa   : > { %v1128_v32 = vadd.f32 %v1127_v29, %v1126_v21  ;;  %v1071_v33 = vpop.f32.mrb[22].mxu1  ;;  %v1411_v34 = vpop.f32.mrb[27].mxu0 }
 0x6fb   : > { %v1405_v36 = vpop.f32.mrb[23].mxu1 }
 0x6fc   : > { %v1130_v37 = vadd.f32 %v1129_v35, %v1128_v32 }
 0x6fe   : > { %1131 = vst.msk [vmem:[%s307_s30] sm:$0xff] %vm316_vm0, %v1130_v37 }
 0x6ff   : > { %1712 = shalt.err (!%p1709_p8)
}
 0x700   : > { %s1713_s6 = scalar_lea.hbm %s2179_s28, 128  ;;  %s1717_s27 = scalar_lea.hbm %s2234_s5, 256 }
 0x701   : > { %p1714_p9 = scmp.ne.s32.totalorder %s2179_s28, %s1713_s6  ;;  %p1718_p3 = scmp.lt.u32.totalorder %s2179_s28, %s2234_s5 }
 0x702   : > { %p1719_p1 = scmp.lt.u32.totalorder %s1717_s27, %s1713_s6  ;;  %p1721_p11 = scmp.lt.u32.totalorder %s1713_s6, %s2179_s28 }
 0x703   : > { %p1715_p4 = pnand %p1714_p9, %p2251_p0 }
 0x704   : > { %p1720_p12 = por %p1719_p1, %p1718_p3 }
 0x705   : > { %p1716_p6 = pneg %p1715_p4 }
 0x706   : > { %p1722_p5 = por %p1721_p11, %p1720_p12 }
 0x708   : > { %p1723_p7 = pnand %p1722_p5, %p1716_p6 }
 0x70a   : > { %1726 = shalt.err (!%p1723_p7)
}
 0x70b   : > { %1430 = dma.vmem_to_hbm [thread:$0]  (%p2251_p0), %s2181_s24, 128, %s2179_s28, %s1133_s21  }
 0x70c PF: > { %s1159_s30 = sand.u32 1, %s1769_s18   ;;  %p2252_p10 = scmp.ne.s32.totalorder %s2247_s13, 0 }
 0x70d   : > { %p2253_p13 = scmp.ge.s32.totalorder %s1789_s23, 2  ;;  %s1160_s16 = scalar_lea.sflag [#allocation7], %s1159_s30 }
 0x70f   : > { %p1450_p2 = pnand %p2253_p13, %p2252_p10 }
 0x711   : > { %1764 = dma.done.wait (!%p1450_p2), %s1160_s16, 128  }
 0x712   : > { %1766 = vsyncadd (!%p1450_p2), %s1160_s16, 4294967168  ;;  %s23_s23 = sadd.s32 1, %s1789_s23   ;;  %s2254_s18 = smov %s1773_s19 }
 0x713   : > { %p20_p8 = scmp.ge.s32.totalorder %s23_s23, 4   ;;  %s2255_s19 = smov %s1777_s20 }
 0x714   : > { %s2256_s20 = smov %s2010_s12  ;;  %s2257_s21 = smov %s1785_s22 }
 0x715   : > { %s2258_s22 = smov %s2260_s29  ;;  %22 = sbr.rel (!%p20_p8) target bundleno = 8 (0x8), region = 115 }
 0x71c   :  { %1165 = vsyncpa [#allocation6], 1 }
 0x71d   :  { %1167 = vsyncpa [#allocation6 + $0x1], 1 }
 0x71e   :  { %1168 = vsyncpa [#allocation9], 1 }
 0x71f   :  { %1169 = vsyncpa [#allocation12], 1 }
 0x720   :  { %1170 = vsyncpa [#allocation7], 1 }
 0x721   :  { %1172 = vsyncpa [#allocation7 + $0x1], 1 }

// kernel: tpu_custom_call.1
= control target key start
LH: loop header
LB: loop body
LE: loop exit
PB: predicated region body
PF: predicated region fallthrough
CT: control target
= control target key end

     0   :  { %10 = vsyncpa [#allocation6], 0  ;;  %s2229_s0 = inlined_call_operand.hbm [shape: f32[2,8,32], index: 0, kind: input, shape index: {}]   ;;  %s2230_s1 = inlined_call_operand.hbm [shape: f32[1,32], index: 1, kind: input, shape index: {}]   ;;  %s2231_s2 = inlined_call_operand.hbm [shape: f32[1,32], index: 2, kind: input, shape index: {}]   ;;  %s2232_s3 = inlined_call_operand.hbm [shape: bf16[32,192], index: 3, kind: input, shape index: {}]   ;;  %s2233_s4 = inlined_call_operand.hbm [shape: bf16[4,16,32], index: 4, kind: input, shape index: {}]   ;;  %s2234_s5 = inlined_call_operand.hbm [shape: f32[2,8,32], index: 5, kind: output, shape index: {}]  }
   0x1   :  { %12 = vsyncpa [#allocation6 + $0x1], 0 }
   0x2   :  { %13 = vsyncpa [#allocation9], 0 }
   0x3   :  { %14 = vsyncpa [#allocation12], 0 }
   0x4   :  { %15 = vsyncpa [#allocation7], 0 }
   0x5   :  { %17 = vsyncpa [#allocation7 + $0x1], 0  ;;  %s1841_s18 = smov 0   ;;  %s1843_s19 = smov 0  }
   0x6   :  { %s1845_s20 = smov 0   ;;  %s1847_s21 = smov 0  }
   0x7   :  { %s1849_s22 = smov 0   ;;  %s1851_s23 = smov 0  }
   0x8 LB: > { %s1266_s24 = sadd.s32 4294967295, %s1789_s23   ;;  %p1268_p0 = scmp.ge.s32.totalorder %s1789_s23, 1  ;;  %s1789_s23 = sphi %s1851_s23, %s23_s23   ;;  %s1785_s22 = sphi %s1849_s22, %s2258_s22   ;;  %s1781_s21 = sphi %s1847_s21, %s2257_s21   ;;  %s1777_s20 = sphi %s1845_s20, %s2256_s20   ;;  %s1773_s19 = sphi %s1843_s19, %s2255_s19   ;;  %s1769_s18 = sphi %s1841_s18, %s2254_s18  }
   0x9   : > { %p1875_p1 = scmp.eq.s32.totalorder %s1266_s24, 0  ;;  %p178_p2 = scmp.lt.s32.totalorder %s1789_s23, 3 }
   0xa   : > { %s1791_s27 = smov [#allocation8]   ;;  %s1792_s29 = smov [#allocation11]  }
   0xb   : > { %s2239_s25 = scalar_select %p1875_p1, 1, 0 }
   0xc   : > { %p1880_p3 = pnand %p1268_p0, %p178_p2  ;;  %s191_s28 = sshll.u32 %s1791_s27, 4  ;;  %s192_s28 = int_to_ptr.vmem [resolvable:$true] %s191_s28 }
   0xd   : > { %s212_s30 = sshll.u32 %s1792_s29, 4  ;;  %s1793_s7 = smov [#allocation10]   ;;  %s1893_s30 = int_to_ptr.vmem [resolvable:$true] %s212_s30 }
   0xe   : > { %s2240_s26 = scalar_select %p1880_p3, 1, 0 }
   0xf   : > { %p1432_p5 = pneg %p1880_p3  ;;  %s1895_s8 = sshll.u32 %s1793_s7, 4  ;;  %s203_s8 = int_to_ptr.vmem [resolvable:$true] %s1895_s8 }
  0x10   : > { %s1557_s11 = scalar_lea.hbm %s2230_s1, 16 }
  0x11   : > { %p1889_p6 = pnand %p1432_p5, %p1875_p1  ;;  %p1558_p7 = scmp.ne.s32.totalorder %s2230_s1, %s1557_s11 }
  0x12   : > { %p1564_p11 = scmp.lt.u32.totalorder %s1557_s11, %s2230_s1 }
  0x13   : > { %p1905_p8 = pneg %p1889_p6 }
  0x15   : > { %p1560_p9 = pnand %p1905_p8, %p1558_p7 }
  0x17   : > { %p1561_p10 = pneg %p1560_p9 }
  0x19   : > { %p1566_p12 = pnand %p1564_p11, %p1561_p10 }
  0x1b   : > { %1569 = shalt.err (!%p1566_p12)
}
  0x1c   : > { %s1570_s17 = scalar_lea.vmem %s192_s28, 16  ;;  %s1577_s27 = scalar_lea.vmem %s192_s28, 32 }
  0x1d   : > { %p1571_p13 = scmp.ne.s32.totalorder %s192_s28, %s1570_s17  ;;  %p1578_p5 = scmp.lt.s32.totalorder %s192_s28, %s192_s28 }
  0x1e   : > { %p1579_p4 = scmp.lt.s32.totalorder %s1577_s27, %s1570_s17 }
  0x1f   : > { %p1573_p0 = pnand %p1571_p13, %p1905_p8 }
  0x20   : > { %p1580_p3 = por %p1579_p4, %p1578_p5 }
  0x21   : > { %p1574_p2 = pneg %p1573_p0 }
  0x23   : > { %p1581_p1 = pnand %p1580_p3, %p1574_p2 }
  0x25   : > { %1584 = shalt.err (!%p1581_p1)
}
  0x26   : > { %1435 = dma.hbm_to_vmem [thread:$0]  (!%p1889_p6), %s2230_s1, 16, %s192_s28, [#allocation9]  }
  0x27   : > { %s1585_s11 = scalar_lea.hbm %s2232_s3, 512 }
  0x28   : > { %p1586_p7 = scmp.ne.s32.totalorder %s2232_s3, %s1585_s11  ;;  %p1592_p1 = scmp.lt.u32.totalorder %s1585_s11, %s2232_s3 }
  0x2a   : > { %p1588_p9 = pnand %p1586_p7, %p1905_p8 }
  0x2c   : > { %p1589_p4 = pneg %p1588_p9 }
  0x2e   : > { %p1594_p3 = pnand %p1592_p1, %p1589_p4 }
  0x30   : > { %1597 = shalt.err (!%p1594_p3)
}
  0x31   : > { %s1598_s28 = scalar_lea.vmem %s1893_s30, 512  ;;  %p1606_p13 = scmp.lt.s32.totalorder %s1893_s30, %s1893_s30 }
  0x32   : > { %p1599_p10 = scmp.ne.s32.totalorder %s1893_s30, %s1598_s28  ;;  %p1607_p0 = scmp.lt.s32.totalorder %s1598_s28, %s1598_s28 }
  0x34   : > { %p1601_p11 = pnand %p1599_p10, %p1905_p8  ;;  %p1608_p2 = por %p1607_p0, %p1606_p13 }
  0x36   : > { %p1602_p12 = pneg %p1601_p11 }
  0x38   : > { %p1609_p5 = pnand %p1608_p2, %p1602_p12 }
  0x3a   : > { %1612 = shalt.err (!%p1609_p5)
}
  0x3b   : > { %s1794_s17 = smov 128   ;;  %s1795_s27 = smov 8  }
  0x3c   : > { %1441 = dma.hbm_to_vmem [thread:$0]  (!%p1889_p6), %s2232_s3, 512, %s1893_s30, [#allocation12], %s1794_s17, %s1794_s17, %s1795_s27  }
  0x3d   : > { %s1613_s11 = scalar_lea.hbm %s2231_s2, 16 }
  0x3e   : > { %p1614_p7 = scmp.ne.s32.totalorder %s2231_s2, %s1613_s11  ;;  %p1620_p1 = scmp.lt.u32.totalorder %s1613_s11, %s2231_s2 }
  0x40   : > { %p1616_p9 = pnand %p1614_p7, %p1905_p8 }
  0x42   : > { %p1617_p4 = pneg %p1616_p9 }
  0x44   : > { %p1622_p3 = pnand %p1620_p1, %p1617_p4 }
  0x46   : > { %1625 = shalt.err (!%p1622_p3)
}
  0x47   : > { %s1626_s28 = scalar_lea.vmem %s203_s8, 16  ;;  %s1633_s30 = scalar_lea.vmem %s203_s8, 32 }
  0x48   : > { %p1627_p10 = scmp.ne.s32.totalorder %s203_s8, %s1626_s28  ;;  %p1634_p13 = scmp.lt.s32.totalorder %s203_s8, %s203_s8 }
  0x49   : > { %p1635_p0 = scmp.lt.s32.totalorder %s1633_s30, %s1626_s28 }
  0x4a   : > { %p1629_p11 = pnand %p1627_p10, %p1905_p8 }
  0x4b   : > { %p1636_p2 = por %p1635_p0, %p1634_p13 }
  0x4c   : > { %p1630_p12 = pneg %p1629_p11 }
  0x4e   : > { %p1637_p5 = pnand %p1636_p2, %p1630_p12 }
  0x50   : > { %1640 = shalt.err (!%p1637_p5)
}
  0x51   : > { %1438 = dma.hbm_to_vmem [thread:$0]  (!%p1889_p6), %s2231_s2, 16, %s203_s8, [#allocation9]  }
  0x52   : > { %s1796_s29 = smov [#allocation13]   ;;  %s1641_s11 = scalar_lea.hbm %s2233_s4, 512 }
  0x53   : > { %s225_s7 = sshll.u32 %s1796_s29, 4  ;;  %p1642_p7 = scmp.ne.s32.totalorder %s2233_s4, %s1641_s11  ;;  %s226_s7 = int_to_ptr.vmem [resolvable:$true] %s225_s7 }
  0x54   : > { %p1648_p1 = scmp.lt.u32.totalorder %s1641_s11, %s2233_s4 }
  0x55   : > { %p1644_p9 = pnand %p1642_p7, %p1905_p8 }
  0x57   : > { %p1645_p4 = pneg %p1644_p9 }
  0x59   : > { %p1650_p3 = pnand %p1648_p1, %p1645_p4 }
  0x5b   : > { %1653 = shalt.err (!%p1650_p3)
}
  0x5c   : > { %s1654_s8 = scalar_lea.vmem %s226_s7, 512  ;;  %p1662_p13 = scmp.lt.s32.totalorder %s226_s7, %s226_s7 }
  0x5d   : > { %p1655_p10 = scmp.ne.s32.totalorder %s226_s7, %s1654_s8  ;;  %p1663_p0 = scmp.lt.s32.totalorder %s1654_s8, %s1654_s8 }
  0x5f   : > { %p1657_p11 = pnand %p1655_p10, %p1905_p8  ;;  %p1664_p2 = por %p1663_p0, %p1662_p13 }
  0x61   : > { %p1658_p12 = pneg %p1657_p11 }
  0x63   : > { %p1665_p5 = pnand %p1664_p2, %p1658_p12 }
  0x65   : > { %1668 = shalt.err (!%p1665_p5)
}
  0x66   : > { %s1797_s28 = smov 64   ;;  %s1798_s14 = smov 4  }
  0x67   : > { %1444 = dma.hbm_to_vmem [thread:$0]  (!%p1889_p6), %s2233_s4, 512, %s226_s7, [#allocation12], %s1797_s28, %s1797_s28, %s1798_s14  }
  0x68   : > { %s1267_s27 = sadd.s32 4294967294, %s1789_s23   ;;  %s35_s29 = sadd.s32 1, %s1785_s22 }
  0x69   : > { %p37_p8 = scmp.ge.s32.totalorder %s35_s29, 2  ;;  %s42_s9 = sadd.s32 1, %s1777_s20 }
  0x6a   : > { %p49_p7 = scmp.ne.s32.totalorder %s1777_s20, %s1773_s19  ;;  %p50_p9 = scmp.eq.s32.totalorder %s1789_s23, 0 }
  0x6b   : > { %s2260_s29 = smov (%p37_p8, %s35_s29), 0  ;;  %p55_p1 = scmp.ne.s32.totalorder %s1773_s19, %s1769_s18 }
  0x6c   : > { %p1989_p4 = por %p50_p9, %p49_p7  ;;  %s39_s6 = ssub.s32 %s1785_s22, %s2260_s29 }
  0x6d   : > { %p165_p6 = scmp.eq.s32.totalorder %s1266_s24, 1  ;;  %p40_p3 = scmp.eq.s32.totalorder %s39_s6, 0 }
  0x6e   : > { %p2244_p10 = scmp.ne.s32.totalorder %s2239_s25, 0  ;;  %p171_p13 = scmp.eq.s32.totalorder %s1267_s27, 1 }
  0x6f   : > { %p2005_p12 = por %p165_p6, %p49_p7  ;;  %p1457_p2 = scmp.lt.s32.totalorder %s1789_s23, 2 }
  0x70   : > { %p2001_p11 = por %p2244_p10, %p55_p1  ;;  %p2012_p0 = por %p171_p13, %p55_p1 }
  0x71   : > { %s2246_s11 = scalar_select %p2005_p12, 1, 0 }
  0x72   : > { %s2010_s12 = scalar_select %p40_p3, %s1777_s20, %s42_s9  }
  0x73   : > { %s2247_s13 = scalar_select %p2012_p0, 1, 0 }
  0x74   : > { %s239_s15 = sand.u32 1, %s1777_s20   ;;  %s1275_s24 = sshll.u32 %s1785_s22, 7 }
  0x75   : > { %s1274_s16 = sshll.u32 %s239_s15, 3  ;;  %s2022_s14 = scalar_lea.hbm %s2229_s0, %s1275_s24 }
  0x76   : > { %s243_s30 = scalar_lea.vmem [#allocation5], %s1274_s16  ;;  %p2026_p5 = pnand %p1457_p2, %p1989_p4 }
  0x77   : > { %s250_s17 = sshll.u32 %s243_s30, 4  ;;  %s240_s9 = scalar_lea.sflag [#allocation6], %s239_s15  ;;  %s2030_s17 = int_to_ptr.vmem [resolvable:$true] %s250_s17 }
  0x78   : > { %s1669_s6 = scalar_lea.hbm %s2022_s14, 128  ;;  %p1671_p7 = pneg %p2026_p5 }
  0x79   : > { %p1670_p8 = scmp.ne.s32.totalorder %s2022_s14, %s1669_s6  ;;  %s1674_s10 = scalar_lea.hbm %s2229_s0, 256 }
  0x7a   : > { %p1675_p4 = scmp.lt.u32.totalorder %s2022_s14, %s2229_s0  ;;  %p1676_p6 = scmp.lt.u32.totalorder %s1674_s10, %s1669_s6 }
  0x7b   : > { %p1672_p9 = pnand %p1671_p7, %p1670_p8  ;;  %p1678_p10 = scmp.lt.u32.totalorder %s1669_s6, %s2022_s14 }
  0x7c   : > { %p1677_p3 = por %p1676_p6, %p1675_p4 }
  0x7d   : > { %p1673_p1 = pneg %p1672_p9 }
  0x7e   : > { %p1679_p13 = por %p1678_p10, %p1677_p3 }
  0x80   : > { %p1680_p2 = pnand %p1679_p13, %p1673_p1 }
  0x82   : > { %1683 = shalt.err (!%p1680_p2)
}
  0x83   : > { %s1684_s15 = scalar_lea.vmem %s2030_s17, 128  ;;  %s1799_s30 = smov [#allocation5]  }
  0x84   : > { %p1685_p8 = scmp.ne.s32.totalorder %s2030_s17, %s1684_s15  ;;  %s1689_s24 = sshll.u32 %s1799_s30, 4  ;;  %s1690_s24 = int_to_ptr.vmem [resolvable:$false] %s1689_s24 }
  0x85   : > { %s1691_s16 = scalar_lea.vmem %s1690_s24, 256  ;;  %p1692_p12 = scmp.lt.s32.totalorder %s2030_s17, %s1690_s24 }
  0x86   : > { %p1687_p9 = pnand %p1685_p8, %p1671_p7  ;;  %p1693_p4 = scmp.lt.s32.totalorder %s1691_s16, %s1684_s15 }
  0x88   : > { %p1688_p0 = pneg %p1687_p9  ;;  %p1694_p6 = por %p1693_p4, %p1692_p12 }
  0x8a   : > { %p1695_p3 = pnand %p1694_p6, %p1688_p0 }
  0x8c   : > { %1698 = shalt.err (!%p1695_p3)
}
  0x8d   : > { %1448 = dma.hbm_to_vmem [thread:$0]  (!%p2026_p5), %s2022_s14, 128, %s2030_s17, %s240_s9  }
  0x8e   : > { %p2249_p1 = scmp.ne.s32.totalorder %s2240_s26, 0 }
  0x8f   : > { %s2060_s6 = sand.u32 (!%p2249_p1), 1, %s1773_s19  }
  0x90   : > { %259 = sbr.rel (%p2249_p1) target bundleno = 1804 (0x70c), region = 40  ;;  %s1277_s10 = sshll.u32 (!%p2249_p1), %s2060_s6, 3 }
  0x91   : > { %s262_s8 = scalar_lea.sflag (!%p2249_p1), [#allocation6], %s2060_s6  ;;  %s265_s28 = scalar_lea.vmem (!%p2249_p1), [#allocation5], %s1277_s10 }
  0x97   : > { %1752 = dma.done.wait (%p2001_p11), %s262_s8, 128  }
  0x98   : > { %1754 = vsyncadd (%p2001_p11), %s262_s8, 4294967168  ;;  %p2250_p12 = scmp.ne.s32.totalorder %s2239_s25, 0 }
  0x9a   : > { %1756 = dma.done.wait (%p2250_p12), [#allocation9], 32  }
  0x9b   : > { %1758 = vsyncadd (%p2250_p12), [#allocation9], 4294967264 }
  0x9c   : > { %1760 = dma.done.wait (%p2250_p12), [#allocation12], 1024  }
  0x9d   : > { %1762 = vsyncadd (%p2250_p12), [#allocation12], 4294966272  ;;  %vm316_vm0 = vcmask 261120   ;;  %v315_v0 = vld [vmem:[%s265_s28] sm:$0xff]  ;;  %v1531_v8 = vld [vmem:[#allocation11] ss:$8 sps:$4 sm:$0xff]  }
  0x9e   : > { %v317_v1 = vsel %vm316_vm0, %v315_v0, 0.0  ;;  %v1529_v7 = vld [vmem:[#allocation11 + $0x4] ss:$8 sps:$4 sm:$0xff]   ;;  %v1532_v9 = vld [vmem:[#allocation11 + $0x14] ss:$8 sps:$4 sm:$0xff]   ;;  %v1800_v10 = vmov 0  }
  0x9f   : > { %318 = vadd.xlane.f32.xlu0 %v317_v1  ;;  %373 = vmatprep.subr.bf16.mxu0 %v1529_v7  ;;  %v1534_v11 = vld [vmem:[#allocation11 + $0x10] ss:$8 sps:$4 sm:$0xff]   ;;  %v1283_v16 = vld [vmem:[#allocation8] ss:$0 sm:$0xff]  ;;  %v1284_v18 = vld [vmem:[#allocation10] ss:$0 sm:$0xff] }
  0xa0   : > { %405 = vmatprep.mubr.bf16.mxu0 %v1800_v10  ;;  %374 = vmatpush1.bf16.msra.mxu0 %v1531_v8  ;;  %v1801_v22 = vmov 0.0   ;;  %vm416_vm1 = vcmask 125952   ;;  %s1802_s25 = smov 32   ;;  %s1803_s26 = smov 64   ;;  %vm1804_vm2 = vmmov 0   ;;  %vm496_vm3 = vcmask 130048  }
  0xa1   : > { %375 = vmatprep.subr.bf16.mxu0 %v1532_v9  ;;  %1340 = vmatprep.subr.bf16.mxu1 %v1801_v22  ;;  %s1805_s7 = smov 48   ;;  %s1806_s14 = smov 16   ;;  %vm733_vm4 = vcmask 1043456   ;;  %vm681_vm5 = vcmask 64512  }
  0xa2   : > { %1342 = vmatprep.mubr.msk.bf16.mxu1 %vm1804_vm2, %v1801_v22  ;;  %s1807_s17 = smov 112   ;;  %s1808_s27 = smov 96  }
  0xa3   : > { %s1809_s9 = smov 80   ;;  %s1310_s15 = sshll.u32 %s1781_s21, 7 }
  0xa4   : > { %376 = vmatpush1.bf16.msra.mxu0 %v1534_v11  ;;  %s307_s30 = scalar_lea.vmem [#allocation14], %s1277_s10  ;;  %s2179_s28 = scalar_lea.hbm %s2234_s5, %s1310_s15 }
  0xa5   : > { %1346 = vmatprep.subr.bf16.mxu0 %v1801_v22  ;;  %s1147_s24 = sshll.u32 %s307_s30, 4  ;;  %s1133_s21 = scalar_lea.sflag [#allocation7], %s2060_s6  ;;  %s2181_s24 = int_to_ptr.vmem [resolvable:$true] %s1147_s24 }
  0xa6   : > { %s1699_s10 = scalar_lea.vmem %s2181_s24, 128  ;;  %p2251_p0 = scmp.ne.s32.totalorder %s2246_s11, 0 }
  0xa7   : > { %p1700_p11 = scmp.ne.s32.totalorder %s2181_s24, %s1699_s10 }
  0xa9   : > { %p1701_p5 = pnand %p1700_p11, %p2251_p0 }
  0xab   : > { %p1702_p7 = pneg %p1701_p5 }
 0x12c   : > { %v319_v2 = vpop.xlane.xlu0 %318 }
 0x12d   : > { %v321_v3 = vmul.f32 0.03125, %v319_v2 }
 0x12f   : > { %v322_v4 = vsub.f32 %v315_v0, %v321_v3 }
 0x131   : > { %v323_v5 = vmul.f32 %v322_v4, %v322_v4 }
 0x133   : > { %v324_v6 = vsel %vm316_vm0, %v323_v5, 0.0 }
 0x134   : > { %325 = vadd.xlane.f32.xlu0 %v324_v6 }
 0x1c1   : > { %v326_v12 = vpop.xlane.xlu0 %325 }
 0x1c2   : > { %v327_v13 = vmul.f32 0.03125, %v326_v12 }
 0x1c4   : > { %v328_v14 = vadd.f32 1e-05, %v327_v13 }
 0x1c6   : > { %1539 = vrsqrt.f32 %v328_v14 }
 0x1d0   : > { %v1540_v15 = vpop.eup %1539 }
 0x1d1   : > { %v330_v17 = vmul.f32 %v1540_v15, %v322_v4 }
 0x1d3   : > { %v337_v19 = vmul.f32 %v1283_v16, %v330_v17 }
 0x1d5   : > { %v344_v20 = vadd.f32 %v1284_v18, %v337_v19 }
 0x1d7   : > { %v345_v21 = vpack.c.bf16 %v344_v20, %v344_v20 }
 0x1d9   : > { %1289 = vmatmul.mubr.msk.bf16.vlgmr.msra.gmra.mrb[0].mxu0 %vm316_vm0, %v345_v21 }
 0x1da   : > { %1348 = vmatprep.mubr.msk.bf16.mxu0 %vm1804_vm2, %v1801_v22 }
 0x2ac   : > { %v407_v23 = vpop.f32.mrb[0].mxu0 }
 0x2ad   : > { %v414_v24 = vmul.f32 0.25, %v407_v23  ;;  %v1313_v25 = vpack.c.bf16 %v407_v23, %v407_v23  ;;  %v409_v26 = vpop.f32.mrb[1].mxu0 }
 0x2ae   : > { %v2083_v27 = vpack.c.bf16 %v409_v26, %v409_v26  ;;  %v411_v28 = vpop.f32.mrb[2].mxu0 }
 0x2af   : > { %v415_v29 = vpack.c.bf16 %v414_v24, %v414_v24  ;;  %454 = vrot.lane.b32.xlu0 %v1313_v25, %s1802_s25  ;;  %422 = vrot.lane.b32.xlu1 %v1313_v25, %s1803_s26  ;;  %v412_v30 = vpop.f32.mrb[3].mxu0  ;;  %s1810_s25 = smov [#allocation14]  }
 0x2b0   : > { %427 = vst.msk [vmem:[#allocation4] sm:$0xf] %vm416_vm1, %v2083_v27  ;;  %s1703_s26 = sshll.u32 %s1810_s25, 4  ;;  %s1704_s26 = int_to_ptr.vmem [resolvable:$false] %s1703_s26 }
 0x2b1   : > { %417 = vst.msk [vmem:[#allocation2] sm:$0xf] %vm416_vm1, %v415_v29  ;;  %p1706_p10 = scmp.lt.s32.totalorder %s2181_s24, %s1704_s26 }
 0x2b3   : > { %436 = vrot.lane.b32.xlu1 %v1313_v25, %s1805_s7  ;;  %s1705_s7 = scalar_lea.vmem %s1704_s26, 256 }
 0x2b4   : > { %p1707_p13 = scmp.lt.s32.totalorder %s1705_s7, %s1699_s10 }
 0x2b6   : > { %p1708_p2 = por %p1707_p13, %p1706_p10 }
 0x2b7   : > { %469 = vrot.lane.b32.xlu1 %v1313_v25, %s1806_s14  ;;  %v492_v48 = vld [vmem:[#allocation4] sm:$0xf] }
 0x2b8   : > { %v484_v42 = vld [vmem:[#allocation2] sm:$0xf]  ;;  %v735_v50 = vsel %vm733_vm4, %v492_v48, 0  ;;  %p1709_p8 = pnand %p1708_p2, %p1702_p7 }
 0x2bb   : > { %431 = vrot.lane.b32.xlu1 %v415_v29, %s1807_s17 }
 0x2bf   : > { %449 = vrot.lane.b32.xlu1 %v415_v29, %s1808_s27 }
 0x2c3   : > { %464 = vrot.lane.b32.xlu1 %v415_v29, %s1809_s9 }
 0x321   : > { %v455_v31 = vpop.permute.xlu0 %454  ;;  %v423_v32 = vpop.permute.xlu1 %422 }
 0x322   : > { %458 = vst.msk [vmem:[#allocation3 + $0x8] sm:$0xf] %vm416_vm1, %v455_v31  ;;  %425 = vst.msk [vmem:[#allocation3] sm:$0xf] %vm416_vm1, %v423_v32 }
 0x325   : > { %v437_v33 = vpop.permute.xlu1 %436 }
 0x326   : > { %440 = vst.msk [vmem:[#allocation3 + $0x4] sm:$0xf] %vm416_vm1, %v437_v33 }
 0x329   : > { %v470_v34 = vpop.permute.xlu1 %469  ;;  %v488_v35 = vld [vmem:[#allocation3] sm:$0xf]  ;;  %v490_v40 = vld [vmem:[#allocation3 + $0x8] sm:$0xf] }
 0x32a   : > { %473 = vst.msk [vmem:[#allocation3 + $0xc] sm:$0xf] %vm416_vm1, %v470_v34  ;;  %v501_v36 = vsel %vm496_vm3, %v488_v35, 0  ;;  %v593_v43 = vsel %vm496_vm3, %v490_v40, 0 }
 0x32b   : > { %1341 = vmatpush3.bf16.xpose.msra.mxu1 %v501_v36 }
 0x32c   : > { %1352 = vmatprep.subr.bf16.mxu1 %v1801_v22 }
 0x32d   : > { %v432_v37 = vpop.permute.xlu1 %431  ;;  %v489_v38 = vld [vmem:[#allocation3 + $0x4] sm:$0xf] }
 0x32e   : > { %435 = vst.msk [vmem:[#allocation2 + $0x4] sm:$0xf] %vm416_vm1, %v432_v37  ;;  %v547_v39 = vsel %vm496_vm3, %v489_v38, 0 }
 0x32f   : > { %1347 = vmatpush3.bf16.xpose.msra.mxu0 %v547_v39 }
 0x330   : > { %1358 = vmatprep.subr.bf16.mxu0 %v1801_v22 }
 0x331   : > { %v450_v41 = vpop.permute.xlu1 %449  ;;  %v491_v44 = vld [vmem:[#allocation3 + $0xc] sm:$0xf] }
 0x332   : > { %453 = vst.msk [vmem:[#allocation2 + $0x8] sm:$0xf] %vm416_vm1, %v450_v41  ;;  %1343 = vmatmul.mubr.msk.bf16.vlgmr.msra.gmra.mrb[0].mxu1 %vm496_vm3, %v484_v42  ;;  %v639_v47 = vsel %vm496_vm3, %v491_v44, 0 }
 0x333   : > { %1353 = vmatpush3.bf16.xpose.msra.mxu1 %v593_v43  ;;  %1354 = vmatprep.mubr.msk.bf16.mxu1 %vm1804_vm2, %v1801_v22 }
 0x334   : > { %1364 = vmatprep.subr.bf16.mxu1 %v1801_v22 }
 0x335   : > { %v465_v45 = vpop.permute.xlu1 %464  ;;  %v485_v46 = vld [vmem:[#allocation2 + $0x4] sm:$0xf] }
 0x336   : > { %468 = vst.msk [vmem:[#allocation2 + $0xc] sm:$0xf] %vm416_vm1, %v465_v45  ;;  %1349 = vmatmul.mubr.msk.bf16.vlgmr.msra.gmra.mrb[4].mxu0 %vm496_vm3, %v485_v46 }
 0x337   : > { %1359 = vmatpush3.bf16.xpose.msra.mxu0 %v639_v47  ;;  %1360 = vmatprep.mubr.msk.bf16.mxu0 %vm1804_vm2, %v1801_v22 }
 0x338   : > { %1370 = vmatprep.subr.bf16.mxu0 %v1801_v22 }
 0x339   : > { %v486_v49 = vld [vmem:[#allocation2 + $0x8] sm:$0xf] }
 0x33a   : > { %1355 = vmatmul.mubr.msk.bf16.vlgmr.msra.gmra.mrb[4].mxu1 %vm496_vm3, %v486_v49 }
 0x33b   : > { %1365 = vmatpush3.bf16.msra.mxu1 %v735_v50  ;;  %1366 = vmatprep.mubr.msk.bf16.mxu1 %vm1804_vm2, %v1801_v22 }
 0x33c   : > { %1376 = vmatprep.subr.bf16.mxu1 %v1801_v22 }
 0x33d   : > { %v487_v51 = vld [vmem:[#allocation2 + $0xc] sm:$0xf] }
 0x33e   : > { %1361 = vmatmul.mubr.msk.bf16.vlgmr.msra.gmra.mrb[8].mxu0 %vm496_vm3, %v487_v51 }
 0x33f   : > { %1372 = vmatprep.mubr.msk.bf16.mxu0 %vm1804_vm2, %v1801_v22 }
 0x405   : > { %v537_v52 = vpop.f32.mrb[0].mxu1 }
 0x406   : > { %v1344_v53 = vpop.f32.mrb[1].mxu1  ;;  %v682_v54 = vsel %vm681_vm5, %v537_v52, -inf }
 0x407   : > { %683 = vmax.xlane.f32.xlu1 %v682_v54  ;;  %v540_v55 = vpop.f32.mrb[2].mxu1  ;;  %v1535_v54 = vld [vmem:[#allocation13] sm:$0xff]  }
 0x408   : > { %v1345_v56 = vpop.f32.mrb[3].mxu1  ;;  %v1536_v55 = vld [vmem:[#allocation13 + $0x8] sm:$0xff]  }
 0x409   : > { %v583_v57 = vpop.f32.mrb[4].mxu0 }
 0x40a   : > { %v1350_v58 = vpop.f32.mrb[5].mxu0  ;;  %v685_v59 = vsel %vm681_vm5, %v583_v57, -inf }
 0x40b   : > { %686 = vmax.xlane.f32.xlu0 %v685_v59  ;;  %v586_v60 = vpop.f32.mrb[6].mxu0 }
 0x40c   : > { %v1351_v61 = vpop.f32.mrb[7].mxu0 }
 0x40d   : > { %v629_v62 = vpop.f32.mrb[4].mxu1 }
 0x40e   : > { %v1356_v63 = vpop.f32.mrb[5].mxu1  ;;  %v688_v0 = vsel %vm681_vm5, %v629_v62, -inf }
 0x40f   : > { %689 = vmax.xlane.f32.xlu1 %v688_v0  ;;  %v632_v1 = vpop.f32.mrb[6].mxu1  ;;  %v1537_v63 = vld [vmem:[#allocation13 + $0x18] sm:$0xff]  }
 0x410   : > { %v1357_v2 = vpop.f32.mrb[7].mxu1 }
 0x411   : > { %v675_v3 = vpop.f32.mrb[8].mxu0 }
 0x412   : > { %v1362_v4 = vpop.f32.mrb[9].mxu0  ;;  %v691_v5 = vsel %vm681_vm5, %v675_v3, -inf }
 0x413   : > { %692 = vmax.xlane.f32.xlu0 %v691_v5  ;;  %v678_v6 = vpop.f32.mrb[10].mxu0 }
 0x414   : > { %v1363_v7 = vpop.f32.mrb[11].mxu0 }
 0x420   : > { %444 = vrot.lane.b32.xlu1 %v2083_v27, %s1807_s17 }
 0x494   : > { %v684_v8 = vpop.xlane.xlu1 %683 }
 0x495   : > { %v694_v9 = vsub.f32 %v537_v52, %v684_v8 }
 0x497   : > { %v698_v10 = vmul.f32 1.442695, %v694_v9 }
 0x498   : > { %v687_v11 = vpop.xlane.xlu0 %686 }
 0x499   : > { %1541 = vpow2.f32 %v698_v10  ;;  %v695_v12 = vsub.f32 %v583_v57, %v687_v11  ;;  %v1538_v57 = vld [vmem:[#allocation13 + $0x10] sm:$0xff]  }
 0x49b   : > { %v700_v13 = vmul.f32 1.442695, %v695_v12 }
 0x49c   : > { %v690_v14 = vpop.xlane.xlu1 %689 }
 0x49d   : > { %1543 = vpow2.f32 %v700_v13  ;;  %v696_v15 = vsub.f32 %v629_v62, %v690_v14 }
 0x49f   : > { %v702_v16 = vmul.f32 1.442695, %v696_v15 }
 0x4a0   : > { %v445_v17 = vpop.permute.xlu1 %444  ;;  %v693_v18 = vpop.xlane.xlu0 %692 }
 0x4a1   : > { %1545 = vpow2.f32 %v702_v16  ;;  %448 = vst.msk [vmem:[#allocation4 + $0x4] sm:$0xf] %vm416_vm1, %v445_v17  ;;  %v697_v19 = vsub.f32 %v675_v3, %v693_v18 }
 0x4a3   : > { %v1542_v20 = vpop.eup %1541  ;;  %v704_v21 = vmul.f32 1.442695, %v697_v19 }
 0x4a4   : > { %v706_v23 = vsel %vm681_vm5, %v1542_v20, 0.0 }
 0x4a5   : > { %1547 = vpow2.f32 %v704_v21  ;;  %707 = vadd.xlane.f32.xlu1 %v706_v23 }
 0x4a7   : > { %v1544_v24 = vpop.eup %1543 }
 0x4a8   : > { %v709_v25 = vsel %vm681_vm5, %v1544_v24, 0.0  ;;  %v493_v26 = vld [vmem:[#allocation4 + $0x4] sm:$0xf] }
 0x4a9   : > { %710 = vadd.xlane.f32.xlu0 %v709_v25  ;;  %v781_v28 = vsel %vm733_vm4, %v493_v26, 0 }
 0x4aa   : > { %1371 = vmatpush3.bf16.msra.mxu0 %v781_v28 }
 0x4ab   : > { %v1546_v29 = vpop.eup %1545  ;;  %1382 = vmatprep.subr.bf16.mxu0 %v1801_v22 }
 0x4ac   : > { %v712_v30 = vsel %vm681_vm5, %v1546_v29, 0.0 }
 0x4ad   : > { %713 = vadd.xlane.f32.xlu1 %v712_v30 }
 0x4af   : > { %v1548_v31 = vpop.eup %1547 }
 0x4b0   : > { %v715_v32 = vsel %vm681_vm5, %v1548_v31, 0.0 }
 0x4b1   : > { %716 = vadd.xlane.f32.xlu0 %v715_v32 }
 0x4be   : > { %474 = vrot.lane.b32.xlu1 %v2083_v27, %s1809_s9 }
 0x4c7   : > { %459 = vrot.lane.b32.xlu0 %v2083_v27, %s1808_s27 }
 0x532   : > { %v708_v33 = vpop.xlane.xlu1 %707 }
 0x533   : > { %1549 = vrcp.f32 %v708_v33 }
 0x536   : > { %v711_v34 = vpop.xlane.xlu0 %710 }
 0x537   : > { %1551 = vrcp.f32 %v711_v34 }
 0x53a   : > { %v714_v35 = vpop.xlane.xlu1 %713 }
 0x53b   : > { %1553 = vrcp.f32 %v714_v35 }
 0x53d   : > { %v1550_v36 = vpop.eup %1549 }
 0x53e   : > { %v722_v37 = vmul.f32 %v1550_v36, %v1542_v20  ;;  %v475_v38 = vpop.permute.xlu1 %474  ;;  %v717_v39 = vpop.xlane.xlu0 %716 }
 0x53f   : > { %478 = vst.msk [vmem:[#allocation4 + $0xc] sm:$0xf] %vm416_vm1, %v475_v38  ;;  %1555 = vrcp.f32 %v717_v39 }
 0x540   : > { %v726_v40 = vpack.c.bf16 %v722_v37, %v722_v37 }
 0x541   : > { %v1552_v41 = vpop.eup %1551 }
 0x542   : > { %v723_v42 = vmul.f32 %v1552_v41, %v1544_v24  ;;  %1367 = vmatmul.mubr.msk.bf16.vlgmr.msra.gmra.mrb[8].mxu1 %vm681_vm5, %v726_v40  ;;  %v460_v43 = vpop.permute.xlu0 %459 }
 0x543   : > { %463 = vst.msk [vmem:[#allocation4 + $0x8] sm:$0xf] %vm416_vm1, %v460_v43  ;;  %1378 = vmatprep.mubr.msk.bf16.mxu1 %vm1804_vm2, %v1801_v22 }
 0x544   : > { %v727_v27 = vpack.c.bf16 %v723_v42, %v723_v42 }
 0x545   : > { %v1554_v44 = vpop.eup %1553 }
 0x546   : > { %1373 = vmatmul.mubr.msk.bf16.vlgmr.msra.gmra.mrb[12].mxu0 %vm681_vm5, %v727_v27  ;;  %v495_v45 = vld [vmem:[#allocation4 + $0xc] sm:$0xf]  ;;  %v724_v48 = vmul.f32 %v1554_v44, %v1546_v29 }
 0x547   : > { %v873_v46 = vsel %vm733_vm4, %v495_v45, 0  ;;  %1384 = vmatprep.mubr.msk.bf16.mxu0 %vm1804_vm2, %v1801_v22 }
 0x548   : > { %1383 = vmatpush3.bf16.msra.mxu0 %v873_v46  ;;  %v728_v53 = vpack.c.bf16 %v724_v48, %v724_v48 }
 0x549   : > { %v1556_v47 = vpop.eup %1555  ;;  %1394 = vmatprep.subr.bf16.mxu0 %v1801_v22 }
 0x54a   : > { %v725_v49 = vmul.f32 %v1556_v47, %v1548_v31  ;;  %v494_v50 = vld [vmem:[#allocation4 + $0x8] sm:$0xf] }
 0x54b   : > { %v827_v51 = vsel %vm733_vm4, %v494_v50, 0 }
 0x54c   : > { %1377 = vmatpush3.bf16.msra.mxu1 %v827_v51  ;;  %v729_v52 = vpack.c.bf16 %v725_v49, %v725_v49 }
 0x54d   : > { %1388 = vmatprep.subr.bf16.mxu1 %v1801_v22 }
 0x54e   : > { %1385 = vmatmul.mubr.msk.bf16.vlgmr.msra.gmra.mrb[16].mxu0 %vm681_vm5, %v729_v52 }
 0x54f   : > { %1379 = vmatmul.mubr.msk.bf16.vlgmr.msra.gmra.mrb[12].mxu1 %vm681_vm5, %v728_v53  ;;  %1396 = vmatprep.mubr.msk.bf16.mxu0 %vm1804_vm2, %v1801_v22 }
 0x550   : > { %1390 = vmatprep.mubr.msk.bf16.mxu1 %vm1804_vm2, %v1801_v22  ;;  %1389 = vmatpush3.bf16.msra.mxu1 %v1535_v54 }
 0x551   : > { %1400 = vmatprep.subr.bf16.mxu1 %v1801_v22  ;;  %1395 = vmatpush3.bf16.msra.mxu0 %v1536_v55 }
 0x552   : > { %1406 = vmatprep.subr.bf16.mxu0 %v1801_v22 }
 0x615   : > { %v771_v56 = vpop.f32.mrb[8].mxu1 }
 0x616   : > { %v915_v58 = vpack.c.bf16 %v771_v56, %v771_v56  ;;  %v1368_v59 = vpop.f32.mrb[9].mxu1 }
 0x617   : > { %v774_v60 = vpop.f32.mrb[10].mxu1 }
 0x618   : > { %v1369_v61 = vpop.f32.mrb[11].mxu1  ;;  %1391 = vmatmul.mubr.msk.bf16.vlgmr.msra.gmra.mrb[16].mxu1 %vm496_vm3, %v915_v58 }
 0x619   : > { %v817_v62 = vpop.f32.mrb[12].mxu0  ;;  %1401 = vmatpush3.bf16.msra.mxu1 %v1538_v57  ;;  %1402 = vmatprep.mubr.msk.bf16.mxu1 %vm1804_vm2, %v1801_v22 }
 0x61a   : > { %v916_v0 = vpack.c.bf16 %v817_v62, %v817_v62  ;;  %v1374_v1 = vpop.f32.mrb[13].mxu0 }
 0x61b   : > { %v820_v2 = vpop.f32.mrb[14].mxu0 }
 0x61c   : > { %v1375_v3 = vpop.f32.mrb[15].mxu0  ;;  %1397 = vmatmul.mubr.msk.bf16.vlgmr.msra.gmra.mrb[20].mxu0 %vm496_vm3, %v916_v0 }
 0x61d   : > { %1407 = vmatpush3.bf16.msra.mxu0 %v1537_v63  ;;  %1408 = vmatprep.mubr.msk.bf16.mxu0 %vm1804_vm2, %v1801_v22 }
 0x621   : > { %v909_v4 = vpop.f32.mrb[16].mxu0 }
 0x622   : > { %v918_v5 = vpack.c.bf16 %v909_v4, %v909_v4  ;;  %v863_v6 = vpop.f32.mrb[12].mxu1  ;;  %v1386_v7 = vpop.f32.mrb[17].mxu0 }
 0x623   : > { %v917_v8 = vpack.c.bf16 %v863_v6, %v863_v6  ;;  %v1380_v9 = vpop.f32.mrb[13].mxu1  ;;  %v912_v10 = vpop.f32.mrb[18].mxu0 }
 0x624   : > { %v866_v11 = vpop.f32.mrb[14].mxu1  ;;  %v1387_v12 = vpop.f32.mrb[19].mxu0  ;;  %1409 = vmatmul.mubr.msk.bf16.vlgmr.msra.gmra.mrb[24].mxu0 %vm496_vm3, %v918_v5 }
 0x625   : > { %v1381_v13 = vpop.f32.mrb[15].mxu1  ;;  %1403 = vmatmul.mubr.msk.bf16.vlgmr.msra.gmra.mrb[20].mxu1 %vm496_vm3, %v917_v8 }
 0x6eb   : > { %v970_v14 = vpop.f32.mrb[16].mxu1 }
 0x6ec   : > { %v1392_v15 = vpop.f32.mrb[17].mxu1  ;;  %v1124_v18 = vsel %vm316_vm0, %v970_v14, 0.0 }
 0x6ed   : > { %v973_v16 = vpop.f32.mrb[18].mxu1 }
 0x6ee   : > { %v1393_v22 = vpop.f32.mrb[19].mxu1 }
 0x6ef   : > { %v1019_v17 = vpop.f32.mrb[20].mxu0 }
 0x6f0   : > { %v1125_v19 = vsel %vm316_vm0, %v1019_v17, 0.0  ;;  %v1398_v20 = vpop.f32.mrb[21].mxu0 }
 0x6f1   : > { %v1126_v21 = vadd.f32 %v1125_v19, %v1124_v18  ;;  %v1022_v23 = vpop.f32.mrb[22].mxu0 }
 0x6f2   : > { %v1399_v24 = vpop.f32.mrb[23].mxu0 }
 0x6f7   : > { %v1117_v25 = vpop.f32.mrb[24].mxu0 }
 0x6f8   : > { %v1068_v26 = vpop.f32.mrb[20].mxu1  ;;  %v1410_v28 = vpop.f32.mrb[25].mxu0  ;;  %v1129_v35 = vsel %vm316_vm0, %v1117_v25, 0.0 }
 0x6f9   : > { %v1127_v29 = vsel %vm316_vm0, %v1068_v26, 0.0  ;;  %v1404_v30 = vpop.f32.mrb[21].mxu1  ;;  %v1120_v31 = vpop.f32.mrb[26].mxu0 }
 0x6fa   : > { %v1128_v32 = vadd.f32 %v1127_v29, %v1126_v21  ;;  %v1071_v33 = vpop.f32.mrb[22].mxu1  ;;  %v1411_v34 = vpop.f32.mrb[27].mxu0 }
 0x6fb   : > { %v1405_v36 = vpop.f32.mrb[23].mxu1 }
 0x6fc   : > { %v1130_v37 = vadd.f32 %v1129_v35, %v1128_v32 }
 0x6fe   : > { %1131 = vst.msk [vmem:[%s307_s30] sm:$0xff] %vm316_vm0, %v1130_v37 }
 0x6ff   : > { %1712 = shalt.err (!%p1709_p8)
}
 0x700   : > { %s1713_s6 = scalar_lea.hbm %s2179_s28, 128  ;;  %s1717_s27 = scalar_lea.hbm %s2234_s5, 256 }
 0x701   : > { %p1714_p9 = scmp.ne.s32.totalorder %s2179_s28, %s1713_s6  ;;  %p1718_p3 = scmp.lt.u32.totalorder %s2179_s28, %s2234_s5 }
 0x702   : > { %p1719_p1 = scmp.lt.u32.totalorder %s1717_s27, %s1713_s6  ;;  %p1721_p11 = scmp.lt.u32.totalorder %s1713_s6, %s2179_s28 }
 0x703   : > { %p1715_p4 = pnand %p1714_p9, %p2251_p0 }
 0x704   : > { %p1720_p12 = por %p1719_p1, %p1718_p3 }
 0x705   : > { %p1716_p6 = pneg %p1715_p4 }
 0x706   : > { %p1722_p5 = por %p1721_p11, %p1720_p12 }
 0x708   : > { %p1723_p7 = pnand %p1722_p5, %p1716_p6 }
 0x70a   : > { %1726 = shalt.err (!%p1723_p7)
}
 0x70b   : > { %1430 = dma.vmem_to_hbm [thread:$0]  (%p2251_p0), %s2181_s24, 128, %s2179_s28, %s1133_s21  }
 0x70c PF: > { %s1159_s30 = sand.u32 1, %s1769_s18   ;;  %p2252_p10 = scmp.ne.s32.totalorder %s2247_s13, 0 }
 0x70d   : > { %p2253_p13 = scmp.ge.s32.totalorder %s1789_s23, 2  ;;  %s1160_s16 = scalar_lea.sflag [#allocation7], %s1159_s30 }
 0x70f   : > { %p1450_p2 = pnand %p2253_p13, %p2252_p10 }
 0x711   : > { %1764 = dma.done.wait (!%p1450_p2), %s1160_s16, 128  }
 0x712   : > { %1766 = vsyncadd (!%p1450_p2), %s1160_s16, 4294967168  ;;  %s23_s23 = sadd.s32 1, %s1789_s23   ;;  %s2254_s18 = smov %s1773_s19 }
 0x713   : > { %p20_p8 = scmp.ge.s32.totalorder %s23_s23, 4   ;;  %s2255_s19 = smov %s1777_s20 }
 0x714   : > { %s2256_s20 = smov %s2010_s12  ;;  %s2257_s21 = smov %s1785_s22 }
 0x715   : > { %s2258_s22 = smov %s2260_s29  ;;  %22 = sbr.rel (!%p20_p8) target bundleno = 8 (0x8), region = 115 }
 0x71c   :  { %1165 = vsyncpa [#allocation6], 1 }
 0x71d   :  { %1167 = vsyncpa [#allocation6 + $0x1], 1 }
 0x71e   :  { %1168 = vsyncpa [#allocation9], 1 }
 0x71f   :  { %1169 = vsyncpa [#allocation12], 1 }
 0x720   :  { %1170 = vsyncpa [#allocation7], 1 }
 0x721   :  { %1172 = vsyncpa [#allocation7 + $0x1], 1 }

</bundles_post_ra>
